<compile_context>
chip_gen: v7x
topology: tpu7x:2x2x1
jax: 0.10.0
libtpu: 0.0.40
codegen_flags: <defaults>
</compile_context>

<pallas_src>
import functools

import jax
import jax.numpy as jnp
from jax import lax
from jax.experimental import pallas as pl
from jax.experimental.pallas import tpu as pltpu


_VMEM_LIMIT = 32 * 1024 * 1024      # safe on v5e/v6e (128 MiB) and v7x (64 MiB)
_TM_MAX = 512                       # rows per GEMM tile (amortizes grid-step cost)
_TB_MAX = 256                       # batch rows per head tile


# ---------------------------------------------------------------------------
# Pallas kernels
# ---------------------------------------------------------------------------
def _linear_kernel(x_ref, w_ref, b_ref, o_ref, *, relu):
    """o = [relu](x @ w + b); x:[TM,K] bf16, w:[K,N] bf16 (VMEM-resident), b:[1,N] f32."""
    acc = jnp.dot(x_ref[...], w_ref[...], preferred_element_type=jnp.float32)
    acc = acc + b_ref[...]
    if relu:
        acc = jnp.maximum(acc, 0.0)
    o_ref[...] = acc.astype(o_ref.dtype)


def _dueling_head_kernel(z_ref, w1_ref, b1_ref, w2_ref, b2_ref, q_ref):
    """Fused dueling heads: 2 matmuls total.

    w1 = [w1v | w1a]                      : [conv_size, 1024]
    w2 = block-diag([v2_w], [a2_w])       : [1024, 1+A]  (col 0 = V, cols 1: = Adv)
    """
    z = z_ref[...]
    h = jnp.dot(z, w1_ref[...], preferred_element_type=jnp.float32) + b1_ref[...]
    h = jnp.maximum(h, 0.0).astype(z.dtype)                     # bf16 for 2nd MXU pass
    out = jnp.dot(h, w2_ref[...], preferred_element_type=jnp.float32) + b2_ref[...]
    v = out[:, 0:1]
    adv = out[:, 1:]
    q = v + (adv - jnp.mean(adv, axis=-1, keepdims=True))
    q_ref[...] = q.astype(q_ref.dtype)


# ---------------------------------------------------------------------------
# Pallas wrappers
# ---------------------------------------------------------------------------
def pallas_linear(x, w, b, *, relu, out_dtype=jnp.bfloat16):
    """x:[M,K] @ w:[K,N] + b:[1,N] (optional ReLU). Tiled over M, W stays resident."""
    M, K = x.shape
    K2, N = w.shape
    assert K == K2
    tm = M if M <= _TM_MAX else _TM_MAX          # full-dim block for small M,
    grid = (pl.cdiv(M, tm),)                     # 512-row tiles (partial tail OK) otherwise
    return pl.pallas_call(
        functools.partial(_linear_kernel, relu=relu),
        out_shape=jax.ShapeDtypeStruct((M, N), out_dtype),
        grid=grid,
        in_specs=[
            pl.BlockSpec((tm, K), lambda i: (i, 0)),   # streamed patch rows
            pl.BlockSpec((K, N), lambda i: (0, 0)),    # weight: VMEM-resident
            pl.BlockSpec((1, N), lambda i: (0, 0)),    # bias:   VMEM-resident
        ],
        out_specs=pl.BlockSpec((tm, N), lambda i: (i, 0)),
        compiler_params=pltpu.CompilerParams(
            dimension_semantics=("parallel",),
            vmem_limit_bytes=_VMEM_LIMIT,
        ),
    )(x, w, b)


def pallas_dueling_heads(z, w1, b1, w2, b2):
    B, CS = z.shape
    H1 = w1.shape[1]
    A = w2.shape[1] - 1
    tb = B if B <= _TB_MAX else _TB_MAX
    grid = (pl.cdiv(B, tb),)
    return pl.pallas_call(
        _dueling_head_kernel,
        out_shape=jax.ShapeDtypeStruct((B, A), jnp.float32),
        grid=grid,
        in_specs=[
            pl.BlockSpec((tb, CS), lambda i: (i, 0)),
            pl.BlockSpec((CS, H1), lambda i: (0, 0)),
            pl.BlockSpec((1, H1), lambda i: (0, 0)),
            pl.BlockSpec((w2.shape[0], w2.shape[1]), lambda i: (0, 0)),
            pl.BlockSpec((1, w2.shape[1]), lambda i: (0, 0)),
        ],
        out_specs=pl.BlockSpec((tb, A), lambda i: (i, 0)),
        compiler_params=pltpu.CompilerParams(
            dimension_semantics=("parallel",),
            vmem_limit_bytes=_VMEM_LIMIT,
        ),
    )(z, w1, b1, w2, b2)


# ---------------------------------------------------------------------------
# Glue: NHWC im2col via strided slices (no gathers), conv == GEMM in-kernel
# ---------------------------------------------------------------------------
def conv2d_relu_nhwc(x, wmat, b, k, stride):
    """x: [N,H,W,C] bf16; wmat: [k*k*C, O] bf16 (rows ordered (kh,kw,C)); b: [1,O] f32."""
    N, H, W, C = x.shape
    Ho = (H - k) // stride + 1
    Wo = (W - k) // stride + 1
    cols = []
    for i in range(k):
        for j in range(k):
            sl = lax.slice(
                x,
                (0, i, j, 0),
                (N, i + (Ho - 1) * stride + 1, j + (Wo - 1) * stride + 1, C),
                (1, stride, stride, 1),
            )
            cols.append(sl)                                     # [N, Ho, Wo, C]
    patches = jnp.concatenate(cols, axis=-1).reshape(N * Ho * Wo, k * k * C)
    out = pallas_linear(patches, wmat, b, relu=True, out_dtype=jnp.bfloat16)
    return out.reshape(N, Ho, Wo, wmat.shape[1])                # NHWC, no transpose


# ---------------------------------------------------------------------------
# Parameters
# ---------------------------------------------------------------------------
def init_params(key, in_shape, nb_actions, conv_size):
    """Deterministic f32 master weights. Linear weights stored as [in, out]."""
    def u(k, shape, fan_in):
        bound = 1.0 / jnp.sqrt(jnp.float32(fan_in))
        return jax.random.uniform(k, shape, jnp.float32, -bound, bound)

    C = in_shape[0]
    ks = jax.random.split(key, 14)
    return {
        "c1_w": u(ks[0], (32, C, 8, 8), C * 8 * 8),
        "c1_b": u(ks[1], (32,), C * 8 * 8),
        "c2_w": u(ks[2], (64, 32, 4, 4), 32 * 4 * 4),
        "c2_b": u(ks[3], (64,), 32 * 4 * 4),
        "c3_w": u(ks[4], (64, 64, 3, 3), 64 * 3 * 3),
        "c3_b": u(ks[5], (64,), 64 * 3 * 3),
        "v1_w": u(ks[6], (conv_size, 512), conv_size),
        "v1_b": u(ks[7], (512,), conv_size),
        "v2_w": u(ks[8], (512, 1), 512),
        "v2_b": u(ks[9], (1,), 512),
        "a1_w": u(ks[10], (conv_size, 512), conv_size),
        "a1_b": u(ks[11], (512,), conv_size),
        "a2_w": u(ks[12], (512, nb_actions), 512),
        "a2_b": u(ks[13], (nb_actions,), 512),
    }


def prepare_params(p, in_shape):
    """One-time host-side prep: bf16 cast, NHWC weight layout, fused head weights."""
    _, H, W = in_shape
    h1, w1 = (H - 8) // 4 + 1, (W - 8) // 4 + 1
    h2, w2 = (h1 - 4) // 2 + 1, (w1 - 4) // 2 + 1
    h3, w3 = (h2 - 3) // 1 + 1, (w2 - 3) // 1 + 1

    def conv_w(w):                     # OIHW -> [kh*kw*C, O], rows ordered (kh, kw, C)
        O, Ci, kh, kw = w.shape
        return jnp.transpose(w, (2, 3, 1, 0)).reshape(kh * kw * Ci, O).astype(jnp.bfloat16)

    def reorder_fc(w):                 # rows (c, h3, w3)  ->  (h3, w3, c)  (NHWC flatten)
        cs, n = w.shape
        return jnp.transpose(w.reshape(64, h3, w3, n), (1, 2, 0, 3)).reshape(cs, n)

    A = p["a2_w"].shape[1]
    w1c = jnp.concatenate([reorder_fc(p["v1_w"]), reorder_fc(p["a1_w"])],
                          axis=1).astype(jnp.bfloat16)                      # [cs, 1024]
    b1c = jnp.concatenate([p["v1_b"], p["a1_b"]]).reshape(1, -1)            # [1, 1024] f32
    w2c = jnp.zeros((1024, 1 + A), jnp.float32)
    w2c = w2c.at[:512, 0:1].set(p["v2_w"])
    w2c = w2c.at[512:, 1:].set(p["a2_w"])
    w2c = w2c.astype(jnp.bfloat16)                                          # [1024, 1+A]
    b2c = jnp.concatenate([p["v2_b"], p["a2_b"]]).reshape(1, -1)            # [1, 1+A]  f32

    return {
        "c1_w": conv_w(p["c1_w"]), "c1_b": p["c1_b"].reshape(1, -1),
        "c2_w": conv_w(p["c2_w"]), "c2_b": p["c2_b"].reshape(1, -1),
        "c3_w": conv_w(p["c3_w"]), "c3_b": p["c3_b"].reshape(1, -1),
        "h1_w": w1c, "h1_b": b1c, "h2_w": w2c, "h2_b": b2c,
    }


# ---------------------------------------------------------------------------
# Model
# ---------------------------------------------------------------------------
@jax.jit
def dqn_forward(kp, x):
    """x: [N, C, H, W] f32 (PyTorch layout). Returns Q: [N, nb_actions] f32."""
    x = jnp.transpose(x, (0, 2, 3, 1)).astype(jnp.bfloat16)     # single NCHW->NHWC
    z = conv2d_relu_nhwc(x, kp["c1_w"], kp["c1_b"], 8, 4)
    z = conv2d_relu_nhwc(z, kp["c2_w"], kp["c2_b"], 4, 2)
    z = conv2d_relu_nhwc(z, kp["c3_w"], kp["c3_b"], 3, 1)
    z = z.reshape(x.shape[0], -1)        # NHWC flatten; head weights were re-ordered to match
    return pallas_dueling_heads(z, kp["h1_w"], kp["h1_b"], kp["h2_w"], kp["h2_b"])


# Pure-JAX f32 reference (no Pallas) for a correctness check.
def dqn_reference(params, x):
    def conv(x, w, b, s):
        y = lax.conv_general_dilated(
            x, w, window_strides=(s, s), padding="VALID",
            dimension_numbers=("NCHW", "OIHW", "NCHW"))
        return jnp.maximum(y + b[None, :, None, None], 0.0)

    z = conv(x, params["c1_w"], params["c1_b"], 4)
    z = conv(z, params["c2_w"], params["c2_b"], 2)
    z = conv(z, params["c3_w"], params["c3_b"], 1)
    z = z.reshape(x.shape[0], -1)
    hv = jnp.maximum(z @ params["v1_w"] + params["v1_b"], 0.0)
    v = hv @ params["v2_w"] + params["v2_b"]
    ha = jnp.maximum(z @ params["a1_w"] + params["a1_b"], 0.0)
    adv = ha @ params["a2_w"] + params["a2_b"]
    return v + (adv - jnp.mean(adv, axis=-1, keepdims=True))


if __name__ == "__main__":
    # Small shapes consistent with the conv stack (8/4 -> 4/2 -> 3/1 needs H,W >= 36).
    in_shape = (4, 36, 36)   # (C, H, W)
    nb_actions = 6
    batch = 2
    # conv output spatial: 36 -> 8 -> 3 -> 1  =>  conv_size = 64 * 1 * 1
    conv_size = 64 * 1 * 1

    key = jax.random.PRNGKey(0)
    k_param, k_x = jax.random.split(key)
    params = init_params(k_param, in_shape, nb_actions, conv_size)
    kparams = prepare_params(params, in_shape)
    x = jax.random.normal(k_x, (batch,) + in_shape, jnp.float32)

    q = jax.block_until_ready(dqn_forward(kparams, x))
    q_ref = jax.block_until_ready(dqn_reference(params, x))

    assert q.shape == (batch, nb_actions), q.shape
    # bf16 inputs with f32 accumulation -> slightly looser tolerance vs the f32 reference.
    assert jnp.allclose(q, q_ref, rtol=3e-2, atol=3e-2), (q, q_ref)
    print("KERNEL_OK")
</pallas_src>

<mosaic_0001>
module attributes {stable_mosaic.version = 11 : i64} {
  func.func @_linear_kernel(%arg0: i32, %arg1: memref<128x256xbf16, #tpu.memory_space<vmem>>, %arg2: memref<256x32xbf16, #tpu.memory_space<vmem>>, %arg3: memref<1x32xf32, #tpu.memory_space<vmem>>, %arg4: memref<128x32xbf16, #tpu.memory_space<vmem>>) attributes {dimension_semantics = [#tpu.dimension_semantics<parallel>], iteration_bounds = array<i64: 1>, scalar_prefetch = 0 : i64, scratch_operands = 0 : i64, tpu.core_type = #tpu.core_type<tc>, window_params = [{transform_indices = @transform_0, window_bounds = array<i64: 128, 256>}, {pipeline_mode = #tpu.pipeline_mode<synchronous>, transform_indices = @transform_1, window_bounds = array<i64: 256, 32>}, {pipeline_mode = #tpu.pipeline_mode<synchronous>, transform_indices = @transform_2, window_bounds = array<i64: 1, 32>}, {transform_indices = @transform_3, window_bounds = array<i64: 128, 32>}]} {
    %c0 = arith.constant 0 : index
    %c0_0 = arith.constant 0 : index
    %0 = vector.load %arg1[%c0, %c0_0] : memref<128x256xbf16, #tpu.memory_space<vmem>>, vector<128x256xbf16>
    %c0_1 = arith.constant 0 : index
    %c0_2 = arith.constant 0 : index
    %1 = vector.load %arg2[%c0_1, %c0_2] : memref<256x32xbf16, #tpu.memory_space<vmem>>, vector<256x32xbf16>
    %cst = arith.constant dense<0.000000e+00> : vector<128x32xf32>
    %2 = tpu.matmul %0, %1, %cst {dimension_numbers = #tpu.dot_dimension_numbers<[1], [0], [0], [1], [0, 0, 1, 1], [], []>} : vector<128x256xbf16>, vector<256x32xbf16>, vector<128x32xf32> -> vector<128x32xf32>
    %c0_3 = arith.constant 0 : index
    %c0_4 = arith.constant 0 : index
    %3 = vector.load %arg3[%c0_3, %c0_4] : memref<1x32xf32, #tpu.memory_space<vmem>>, vector<1x32xf32>
    %4 = vector.broadcast %3 : vector<1x32xf32> to vector<128x32xf32>
    %5 = arith.addf %2, %4 : vector<128x32xf32>
    %cst_5 = arith.constant 0.000000e+00 : f32
    %6 = vector.broadcast %cst_5 : f32 to vector<128x32xf32>
    %7 = arith.maximumf %5, %6 : vector<128x32xf32>
    %8 = arith.truncf %7 : vector<128x32xf32> to vector<128x32xbf16>
    %c0_6 = arith.constant 0 : index
    %c0_7 = arith.constant 0 : index
    %9 = vector.load %arg4[%c0_6, %c0_7] : memref<128x32xbf16, #tpu.memory_space<vmem>>, vector<128x32xbf16>
    tpu.vector_store %arg4[%c0_6, %c0_7], %8 {strides = array<i32>} : memref<128x32xbf16, #tpu.memory_space<vmem>>, vector<128x32xbf16>,
    return
  }
  func.func @transform_0(%arg0: i32) -> (i32, i32) {
    %c0_i32 = arith.constant 0 : i32
    %c0_i32_0 = arith.constant 0 : i32
    return %arg0, %c0_i32 : i32, i32
  }
  func.func @transform_1(%arg0: i32) -> (i32, i32) {
    %c0_i32 = arith.constant 0 : i32
    %c0_i32_0 = arith.constant 0 : i32
    %c0_i32_1 = arith.constant 0 : i32
    return %c0_i32, %c0_i32_0 : i32, i32
  }
  func.func @transform_2(%arg0: i32) -> (i32, i32) {
    %c0_i32 = arith.constant 0 : i32
    %c0_i32_0 = arith.constant 0 : i32
    %c0_i32_1 = arith.constant 0 : i32
    return %c0_i32, %c0_i32_0 : i32, i32
  }
  func.func @transform_3(%arg0: i32) -> (i32, i32) {
    %c0_i32 = arith.constant 0 : i32
    %c0_i32_0 = arith.constant 0 : i32
    return %arg0, %c0_i32 : i32, i32
  }
}

module attributes {stable_mosaic.version = 11 : i64} {
  func.func @_linear_kernel(%arg0: i32, %arg1: memref<18x512xbf16, #tpu.memory_space<vmem>>, %arg2: memref<512x64xbf16, #tpu.memory_space<vmem>>, %arg3: memref<1x64xf32, #tpu.memory_space<vmem>>, %arg4: memref<18x64xbf16, #tpu.memory_space<vmem>>) attributes {dimension_semantics = [#tpu.dimension_semantics<parallel>], iteration_bounds = array<i64: 1>, scalar_prefetch = 0 : i64, scratch_operands = 0 : i64, tpu.core_type = #tpu.core_type<tc>, window_params = [{transform_indices = @transform_0, window_bounds = array<i64: 18, 512>}, {pipeline_mode = #tpu.pipeline_mode<synchronous>, transform_indices = @transform_1, window_bounds = array<i64: 512, 64>}, {pipeline_mode = #tpu.pipeline_mode<synchronous>, transform_indices = @transform_2, window_bounds = array<i64: 1, 64>}, {transform_indices = @transform_3, window_bounds = array<i64: 18, 64>}]} {
    %c0 = arith.constant 0 : index
    %c0_0 = arith.constant 0 : index
    %0 = vector.load %arg1[%c0, %c0_0] : memref<18x512xbf16, #tpu.memory_space<vmem>>, vector<18x512xbf16>
    %c0_1 = arith.constant 0 : index
    %c0_2 = arith.constant 0 : index
    %1 = vector.load %arg2[%c0_1, %c0_2] : memref<512x64xbf16, #tpu.memory_space<vmem>>, vector<512x64xbf16>
    %cst = arith.constant dense<0.000000e+00> : vector<18x64xf32>
    %2 = tpu.matmul %0, %1, %cst {dimension_numbers = #tpu.dot_dimension_numbers<[1], [0], [0], [1], [0, 0, 1, 1], [], []>} : vector<18x512xbf16>, vector<512x64xbf16>, vector<18x64xf32> -> vector<18x64xf32>
    %c0_3 = arith.constant 0 : index
    %c0_4 = arith.constant 0 : index
    %3 = vector.load %arg3[%c0_3, %c0_4] : memref<1x64xf32, #tpu.memory_space<vmem>>, vector<1x64xf32>
    %4 = vector.broadcast %3 : vector<1x64xf32> to vector<18x64xf32>
    %5 = arith.addf %2, %4 : vector<18x64xf32>
    %cst_5 = arith.constant 0.000000e+00 : f32
    %6 = vector.broadcast %cst_5 : f32 to vector<18x64xf32>
    %7 = arith.maximumf %5, %6 : vector<18x64xf32>
    %8 = arith.truncf %7 : vector<18x64xf32> to vector<18x64xbf16>
    %c0_6 = arith.constant 0 : index
    %c0_7 = arith.constant 0 : index
    %9 = vector.load %arg4[%c0_6, %c0_7] : memref<18x64xbf16, #tpu.memory_space<vmem>>, vector<18x64xbf16>
    tpu.vector_store %arg4[%c0_6, %c0_7], %8 {strides = array<i32>} : memref<18x64xbf16, #tpu.memory_space<vmem>>, vector<18x64xbf16>,
    return
  }
  func.func @transform_0(%arg0: i32) -> (i32, i32) {
    %c0_i32 = arith.constant 0 : i32
    %c0_i32_0 = arith.constant 0 : i32
    return %arg0, %c0_i32 : i32, i32
  }
  func.func @transform_1(%arg0: i32) -> (i32, i32) {
    %c0_i32 = arith.constant 0 : i32
    %c0_i32_0 = arith.constant 0 : i32
    %c0_i32_1 = arith.constant 0 : i32
    return %c0_i32, %c0_i32_0 : i32, i32
  }
  func.func @transform_2(%arg0: i32) -> (i32, i32) {
    %c0_i32 = arith.constant 0 : i32
    %c0_i32_0 = arith.constant 0 : i32
    %c0_i32_1 = arith.constant 0 : i32
    return %c0_i32, %c0_i32_0 : i32, i32
  }
  func.func @transform_3(%arg0: i32) -> (i32, i32) {
    %c0_i32 = arith.constant 0 : i32
    %c0_i32_0 = arith.constant 0 : i32
    return %arg0, %c0_i32 : i32, i32
  }
}

module attributes {stable_mosaic.version = 11 : i64} {
  func.func @_linear_kernel(%arg0: i32, %arg1: memref<2x576xbf16, #tpu.memory_space<vmem>>, %arg2: memref<576x64xbf16, #tpu.memory_space<vmem>>, %arg3: memref<1x64xf32, #tpu.memory_space<vmem>>, %arg4: memref<2x64xbf16, #tpu.memory_space<vmem>>) attributes {dimension_semantics = [#tpu.dimension_semantics<parallel>], iteration_bounds = array<i64: 1>, scalar_prefetch = 0 : i64, scratch_operands = 0 : i64, tpu.core_type = #tpu.core_type<tc>, window_params = [{transform_indices = @transform_0, window_bounds = array<i64: 2, 576>}, {pipeline_mode = #tpu.pipeline_mode<synchronous>, transform_indices = @transform_1, window_bounds = array<i64: 576, 64>}, {pipeline_mode = #tpu.pipeline_mode<synchronous>, transform_indices = @transform_2, window_bounds = array<i64: 1, 64>}, {transform_indices = @transform_3, window_bounds = array<i64: 2, 64>}]} {
    %c0 = arith.constant 0 : index
    %c0_0 = arith.constant 0 : index
    %0 = vector.load %arg1[%c0, %c0_0] : memref<2x576xbf16, #tpu.memory_space<vmem>>, vector<2x576xbf16>
    %c0_1 = arith.constant 0 : index
    %c0_2 = arith.constant 0 : index
    %1 = vector.load %arg2[%c0_1, %c0_2] : memref<576x64xbf16, #tpu.memory_space<vmem>>, vector<576x64xbf16>
    %cst = arith.constant dense<0.000000e+00> : vector<2x64xf32>
    %2 = tpu.matmul %0, %1, %cst {dimension_numbers = #tpu.dot_dimension_numbers<[1], [0], [0], [1], [0, 0, 1, 1], [], []>} : vector<2x576xbf16>, vector<576x64xbf16>, vector<2x64xf32> -> vector<2x64xf32>
    %c0_3 = arith.constant 0 : index
    %c0_4 = arith.constant 0 : index
    %3 = vector.load %arg3[%c0_3, %c0_4] : memref<1x64xf32, #tpu.memory_space<vmem>>, vector<1x64xf32>
    %4 = vector.broadcast %3 : vector<1x64xf32> to vector<2x64xf32>
    %5 = arith.addf %2, %4 : vector<2x64xf32>
    %cst_5 = arith.constant 0.000000e+00 : f32
    %6 = vector.broadcast %cst_5 : f32 to vector<2x64xf32>
    %7 = arith.maximumf %5, %6 : vector<2x64xf32>
    %8 = arith.truncf %7 : vector<2x64xf32> to vector<2x64xbf16>
    %c0_6 = arith.constant 0 : index
    %c0_7 = arith.constant 0 : index
    %9 = vector.load %arg4[%c0_6, %c0_7] : memref<2x64xbf16, #tpu.memory_space<vmem>>, vector<2x64xbf16>
    tpu.vector_store %arg4[%c0_6, %c0_7], %8 {strides = array<i32>} : memref<2x64xbf16, #tpu.memory_space<vmem>>, vector<2x64xbf16>,
    return
  }
  func.func @transform_0(%arg0: i32) -> (i32, i32) {
    %c0_i32 = arith.constant 0 : i32
    %c0_i32_0 = arith.constant 0 : i32
    return %arg0, %c0_i32 : i32, i32
  }
  func.func @transform_1(%arg0: i32) -> (i32, i32) {
    %c0_i32 = arith.constant 0 : i32
    %c0_i32_0 = arith.constant 0 : i32
    %c0_i32_1 = arith.constant 0 : i32
    return %c0_i32, %c0_i32_0 : i32, i32
  }
  func.func @transform_2(%arg0: i32) -> (i32, i32) {
    %c0_i32 = arith.constant 0 : i32
    %c0_i32_0 = arith.constant 0 : i32
    %c0_i32_1 = arith.constant 0 : i32
    return %c0_i32, %c0_i32_0 : i32, i32
  }
  func.func @transform_3(%arg0: i32) -> (i32, i32) {
    %c0_i32 = arith.constant 0 : i32
    %c0_i32_0 = arith.constant 0 : i32
    return %arg0, %c0_i32 : i32, i32
  }
}

module attributes {stable_mosaic.version = 11 : i64} {
  func.func @_dueling_head_kernel(%arg0: i32, %arg1: memref<2x64xbf16, #tpu.memory_space<vmem>>, %arg2: memref<64x1024xbf16, #tpu.memory_space<vmem>>, %arg3: memref<1x1024xf32, #tpu.memory_space<vmem>>, %arg4: memref<1024x7xbf16, #tpu.memory_space<vmem>>, %arg5: memref<1x7xf32, #tpu.memory_space<vmem>>, %arg6: memref<2x6xf32, #tpu.memory_space<vmem>>) attributes {dimension_semantics = [#tpu.dimension_semantics<parallel>], iteration_bounds = array<i64: 1>, scalar_prefetch = 0 : i64, scratch_operands = 0 : i64, tpu.core_type = #tpu.core_type<tc>, window_params = [{transform_indices = @transform_0, window_bounds = array<i64: 2, 64>}, {pipeline_mode = #tpu.pipeline_mode<synchronous>, transform_indices = @transform_1, window_bounds = array<i64: 64, 1024>}, {pipeline_mode = #tpu.pipeline_mode<synchronous>, transform_indices = @transform_2, window_bounds = array<i64: 1, 1024>}, {pipeline_mode = #tpu.pipeline_mode<synchronous>, transform_indices = @transform_3, window_bounds = array<i64: 1024, 7>}, {pipeline_mode = #tpu.pipeline_mode<synchronous>, transform_indices = @transform_4, window_bounds = array<i64: 1, 7>}, {transform_indices = @transform_5, window_bounds = array<i64: 2, 6>}]} {
    %c0 = arith.constant 0 : index
    %c0_0 = arith.constant 0 : index
    %0 = vector.load %arg1[%c0, %c0_0] : memref<2x64xbf16, #tpu.memory_space<vmem>>, vector<2x64xbf16>
    %c0_1 = arith.constant 0 : index
    %c0_2 = arith.constant 0 : index
    %1 = vector.load %arg2[%c0_1, %c0_2] : memref<64x1024xbf16, #tpu.memory_space<vmem>>, vector<64x1024xbf16>
    %cst = arith.constant dense<0.000000e+00> : vector<2x1024xf32>
    %2 = tpu.matmul %0, %1, %cst {dimension_numbers = #tpu.dot_dimension_numbers<[1], [0], [0], [1], [0, 0, 1, 1], [], []>} : vector<2x64xbf16>, vector<64x1024xbf16>, vector<2x1024xf32> -> vector<2x1024xf32>
    %c0_3 = arith.constant 0 : index
    %c0_4 = arith.constant 0 : index
    %3 = vector.load %arg3[%c0_3, %c0_4] : memref<1x1024xf32, #tpu.memory_space<vmem>>, vector<1x1024xf32>
    %4 = vector.broadcast %3 : vector<1x1024xf32> to vector<2x1024xf32>
    %5 = arith.addf %2, %4 : vector<2x1024xf32>
    %cst_5 = arith.constant 0.000000e+00 : f32
    %6 = vector.broadcast %cst_5 : f32 to vector<2x1024xf32>
    %7 = arith.maximumf %5, %6 : vector<2x1024xf32>
    %8 = arith.truncf %7 : vector<2x1024xf32> to vector<2x1024xbf16>
    %c0_6 = arith.constant 0 : index
    %c0_7 = arith.constant 0 : index
    %9 = vector.load %arg4[%c0_6, %c0_7] : memref<1024x7xbf16, #tpu.memory_space<vmem>>, vector<1024x7xbf16>
    %cst_8 = arith.constant dense<0.000000e+00> : vector<2x7xf32>
    %10 = tpu.matmul %8, %9, %cst_8 {dimension_numbers = #tpu.dot_dimension_numbers<[1], [0], [0], [1], [0, 0, 1, 1], [], []>} : vector<2x1024xbf16>, vector<1024x7xbf16>, vector<2x7xf32> -> vector<2x7xf32>
    %c0_9 = arith.constant 0 : index
    %c0_10 = arith.constant 0 : index
    %11 = vector.load %arg5[%c0_9, %c0_10] : memref<1x7xf32, #tpu.memory_space<vmem>>, vector<1x7xf32>
    %12 = vector.broadcast %11 : vector<1x7xf32> to vector<2x7xf32>
    %13 = arith.addf %10, %12 : vector<2x7xf32>
    %14 = vector.extract_strided_slice %13 {offsets = [0, 0], sizes = [2, 1], strides = [1, 1]} : vector<2x7xf32> to vector<2x1xf32>
    %15 = vector.extract_strided_slice %13 {offsets = [0, 1], sizes = [2, 6], strides = [1, 1]} : vector<2x7xf32> to vector<2x6xf32>
    %cst_11 = arith.constant dense<0.000000e+00> : vector<2xf32>
    %16 = vector.multi_reduction <add>, %15, %cst_11 [1] : vector<2x6xf32> to vector<2xf32>
    %17 = vector.shape_cast %16 : vector<2xf32> to vector<2x1xf32>
    %cst_12 = arith.constant 6.000000e+00 : f32
    %18 = vector.broadcast %cst_12 : f32 to vector<2x1xf32>
    %19 = arith.divf %17, %18 : vector<2x1xf32>
    %20 = vector.broadcast %19 : vector<2x1xf32> to vector<2x6xf32>
    %21 = arith.subf %15, %20 : vector<2x6xf32>
    %22 = vector.broadcast %14 : vector<2x1xf32> to vector<2x6xf32>
    %23 = arith.addf %22, %21 : vector<2x6xf32>
    %c0_13 = arith.constant 0 : index
    %c0_14 = arith.constant 0 : index
    %24 = vector.load %arg6[%c0_13, %c0_14] : memref<2x6xf32, #tpu.memory_space<vmem>>, vector<2x6xf32>
    tpu.vector_store %arg6[%c0_13, %c0_14], %23 {strides = array<i32>} : memref<2x6xf32, #tpu.memory_space<vmem>>, vector<2x6xf32>,
    return
  }
  func.func @transform_0(%arg0: i32) -> (i32, i32) {
    %c0_i32 = arith.constant 0 : i32
    %c0_i32_0 = arith.constant 0 : i32
    return %arg0, %c0_i32 : i32, i32
  }
  func.func @transform_1(%arg0: i32) -> (i32, i32) {
    %c0_i32 = arith.constant 0 : i32
    %c0_i32_0 = arith.constant 0 : i32
    %c0_i32_1 = arith.constant 0 : i32
    return %c0_i32, %c0_i32_0 : i32, i32
  }
  func.func @transform_2(%arg0: i32) -> (i32, i32) {
    %c0_i32 = arith.constant 0 : i32
    %c0_i32_0 = arith.constant 0 : i32
    %c0_i32_1 = arith.constant 0 : i32
    return %c0_i32, %c0_i32_0 : i32, i32
  }
  func.func @transform_3(%arg0: i32) -> (i32, i32) {
    %c0_i32 = arith.constant 0 : i32
    %c0_i32_0 = arith.constant 0 : i32
    %c0_i32_1 = arith.constant 0 : i32
    return %c0_i32, %c0_i32_0 : i32, i32
  }
  func.func @transform_4(%arg0: i32) -> (i32, i32) {
    %c0_i32 = arith.constant 0 : i32
    %c0_i32_0 = arith.constant 0 : i32
    %c0_i32_1 = arith.constant 0 : i32
    return %c0_i32, %c0_i32_0 : i32, i32
  }
  func.func @transform_5(%arg0: i32) -> (i32, i32) {
    %c0_i32 = arith.constant 0 : i32
    %c0_i32_0 = arith.constant 0 : i32
    return %arg0, %c0_i32 : i32, i32
  }
}

</mosaic_0001>

<bundles_post_ra>
// kernel: dqn_forward.4
= control target key start
LH: loop header
LB: loop body
LE: loop exit
PB: predicated region body
PF: predicated region fallthrough
CT: control target
= control target key end

     0   :  { %vm423_vm0 = vcmask 257024   ;;  %s830_s1 = inlined_call_operand.vmem [shape: bf16[256,32], index: 1, kind: input, shape index: {}]   ;;  %s831_s0 = inlined_call_operand.vmem [shape: bf16[128,256], index: 0, kind: input, shape index: {}]   ;;  %s832_s2 = inlined_call_operand.vmem [shape: f32[1,32], index: 2, kind: input, shape index: {}]   ;;  %s833_s3 = inlined_call_operand.vmem [shape: bf16[128,32], index: 3, kind: output, shape index: {}]  }
   0x1   :  { %v589_v0 = vld [vmem:[%s830_s1 + $0x40] sm:$0xff]   ;;  %v591_v2 = vld [vmem:[%s830_s1 + $0x48] sm:$0xff]   ;;  %v593_v4 = vld [vmem:[%s830_s1 + $0x50] sm:$0xff]  }
   0x2   :  { %v590_v1 = vld [vmem:[%s830_s1] sm:$0xff]   ;;  %509 = vmatprep.subr.bf16.mxu0 %v589_v0  ;;  %573 = vmatprep.subr.bf16.mxu1 %v589_v0  ;;  %v592_v3 = vld [vmem:[%s830_s1 + $0x8] sm:$0xff]   ;;  %v594_v5 = vld [vmem:[%s830_s1 + $0x10] sm:$0xff]  }
   0x3   :  { %510 = vmatpush3.bf16.msra.mxu0 %v590_v1  ;;  %581 = vmatpush3.bf16.msra.mxu1 %v590_v1  ;;  %v595_v6 = vld [vmem:[%s830_s1 + $0x58] sm:$0xff]   ;;  %v597_v8 = vld [vmem:[%s830_s1 + $0x60] sm:$0xff]   ;;  %v599_v10 = vld [vmem:[%s830_s1 + $0x68] sm:$0xff]  }
   0x4   :  { %511 = vmatprep.subr.bf16.mxu0 %v591_v2  ;;  %574 = vmatprep.subr.bf16.mxu1 %v591_v2  ;;  %v596_v7 = vld [vmem:[%s830_s1 + $0x18] sm:$0xff]   ;;  %v598_v9 = vld [vmem:[%s830_s1 + $0x20] sm:$0xff]   ;;  %v600_v13 = vld [vmem:[%s830_s1 + $0x28] sm:$0xff]  }
   0x5   :  { %v607_v11 = vld [vmem:[%s831_s0 + $0x4] ss:$8 sps:$4 sm:$0xff]   ;;  %v601_v14 = vld [vmem:[%s830_s1 + $0x70] sm:$0xff]   ;;  %v603_v16 = vld [vmem:[%s830_s1 + $0x78] sm:$0xff]  }
   0x6   :  { %v610_v12 = vld [vmem:[%s831_s0 + $0x44] ss:$8 sps:$4 sm:$0xff]   ;;  %278 = vmatprep.mubr.bf16.mxu0 %v607_v11  ;;  %v602_v15 = vld [vmem:[%s830_s1 + $0x30] sm:$0xff]   ;;  %v604_v17 = vld [vmem:[%s830_s1 + $0x38] sm:$0xff]  }
   0x7   :  { %512 = vmatpush3.bf16.msra.mxu0 %v592_v3  ;;  %582 = vmatpush3.bf16.msra.mxu1 %v592_v3  ;;  %v605_v18 = vld [vmem:[%s831_s0] ss:$8 sps:$4 sm:$0xff]   ;;  %v611_v20 = vld [vmem:[%s831_s0 + $0x14] ss:$8 sps:$4 sm:$0xff]   ;;  %v615_v22 = vld [vmem:[%s831_s0 + $0x10] ss:$8 sps:$4 sm:$0xff]  }
   0x8   :  { %513 = vmatprep.subr.bf16.mxu0 %v593_v4  ;;  %575 = vmatprep.subr.bf16.mxu1 %v593_v4  ;;  %v608_v19 = vld [vmem:[%s831_s0 + $0x40] ss:$8 sps:$4 sm:$0xff]   ;;  %v613_v21 = vld [vmem:[%s831_s0 + $0x54] ss:$8 sps:$4 sm:$0xff]   ;;  %v616_v23 = vld [vmem:[%s831_s0 + $0x50] ss:$8 sps:$4 sm:$0xff]  }
   0x9   :  { %310 = vmatprep.mubr.bf16.mxu1 %v610_v12  ;;  %v617_v24 = vld [vmem:[%s831_s0 + $0x24] ss:$8 sps:$4 sm:$0xff]   ;;  %v621_v26 = vld [vmem:[%s831_s0 + $0x20] ss:$8 sps:$4 sm:$0xff]   ;;  %v623_v28 = vld [vmem:[%s831_s0 + $0x34] ss:$8 sps:$4 sm:$0xff]  }
   0xa   :  { %v619_v25 = vld [vmem:[%s831_s0 + $0x64] ss:$8 sps:$4 sm:$0xff]   ;;  %v622_v27 = vld [vmem:[%s831_s0 + $0x60] ss:$8 sps:$4 sm:$0xff]   ;;  %v625_v29 = vld [vmem:[%s831_s0 + $0x74] ss:$8 sps:$4 sm:$0xff]  }
   0xb   :  { %514 = vmatpush3.bf16.msra.mxu0 %v594_v5  ;;  %583 = vmatpush3.bf16.msra.mxu1 %v594_v5  ;;  %v627_v30 = vld [vmem:[%s831_s0 + $0x30] ss:$8 sps:$4 sm:$0xff]   ;;  %v748_v34 = vld [vmem:[%s832_s2] ss:$0 sm:$0xff] }
   0xc   :  { %515 = vmatprep.subr.bf16.mxu0 %v595_v6  ;;  %576 = vmatprep.subr.bf16.mxu1 %v595_v6  ;;  %v628_v31 = vld [vmem:[%s831_s0 + $0x70] ss:$8 sps:$4 sm:$0xff]  }
   0xf   :  { %516 = vmatpush3.bf16.msra.mxu0 %v596_v7  ;;  %584 = vmatpush3.bf16.msra.mxu1 %v596_v7 }
  0x10   :  { %517 = vmatprep.subr.bf16.mxu0 %v597_v8  ;;  %577 = vmatprep.subr.bf16.mxu1 %v597_v8 }
  0x13   :  { %518 = vmatpush3.bf16.msra.mxu0 %v598_v9  ;;  %585 = vmatpush3.bf16.msra.mxu1 %v598_v9 }
  0x14   :  { %519 = vmatprep.subr.bf16.mxu0 %v599_v10  ;;  %578 = vmatprep.subr.bf16.mxu1 %v599_v10 }
  0x17   :  { %520 = vmatpush3.bf16.msra.mxu0 %v600_v13  ;;  %586 = vmatpush3.bf16.msra.mxu1 %v600_v13 }
  0x18   :  { %521 = vmatprep.subr.bf16.mxu0 %v601_v14  ;;  %579 = vmatprep.subr.bf16.mxu1 %v601_v14 }
  0x1b   :  { %522 = vmatpush3.bf16.msra.mxu0 %v602_v15  ;;  %587 = vmatpush3.bf16.msra.mxu1 %v602_v15 }
  0x1c   :  { %523 = vmatprep.subr.bf16.mxu0 %v603_v16  ;;  %580 = vmatprep.subr.bf16.mxu1 %v603_v16 }
  0x1f   :  { %524 = vmatpush3.bf16.msra.mxu0 %v604_v17  ;;  %588 = vmatpush3.bf16.msra.mxu1 %v604_v17 }
  0x22   :  { %279 = vmatmul.mubr.bf16.vlgmr.msra.gmra.mrb[0].mxu0 %v605_v18  ;;  %311 = vmatmul.mubr.bf16.vlgmr.msra.gmra.mrb[0].mxu1 %v608_v19 }
  0x23   :  { %286 = vmatprep.mubr.bf16.mxu0 %v611_v20  ;;  %318 = vmatprep.mubr.bf16.mxu1 %v613_v21 }
  0x2a   :  { %287 = vmatmul.mubr.bf16.gmra.mrb[4].mxu0 %v615_v22  ;;  %319 = vmatmul.mubr.bf16.gmra.mrb[4].mxu1 %v616_v23 }
  0x2b   :  { %294 = vmatprep.mubr.bf16.mxu0 %v617_v24  ;;  %326 = vmatprep.mubr.bf16.mxu1 %v619_v25 }
  0x32   :  { %295 = vmatmul.mubr.bf16.gmra.mrb[8].mxu0 %v621_v26  ;;  %327 = vmatmul.mubr.bf16.gmra.mrb[8].mxu1 %v622_v27 }
  0x33   :  { %302 = vmatprep.mubr.bf16.mxu0 %v623_v28  ;;  %334 = vmatprep.mubr.bf16.mxu1 %v625_v29 }
  0x3a   :  { %303 = vmatmul.mubr.bf16.gmra.mrb[12].mxu0 %v627_v30  ;;  %335 = vmatmul.mubr.bf16.gmra.mrb[12].mxu1 %v628_v31 }
  0xf5   :  { %v525_v32 = vpop.f32.mrb[0].mxu0  ;;  %v549_v33 = vpop.f32.mrb[0].mxu1 }
  0xf6   :  { %v526_v35 = vpop.f32.mrb[1].mxu0  ;;  %v550_v36 = vpop.f32.mrb[1].mxu1 }
  0xf7   :  { %v527_v37 = vadd.f32 %v526_v35, %v525_v32  ;;  %v551_v38 = vadd.f32 %v550_v36, %v549_v33  ;;  %v528_v39 = vpop.f32.mrb[2].mxu0  ;;  %v552_v40 = vpop.f32.mrb[2].mxu1 }
  0xf8   :  { %v529_v41 = vpop.f32.mrb[3].mxu0  ;;  %v553_v42 = vpop.f32.mrb[3].mxu1 }
  0xf9   :  { %v281_v43 = vadd.f32 %v527_v37, %v748_v34  ;;  %v313_v44 = vadd.f32 %v551_v38, %v748_v34  ;;  %v530_v45 = vadd.f32 %v529_v41, %v528_v39  ;;  %v554_v46 = vadd.f32 %v553_v42, %v552_v40 }
  0xfb   :  { %v343_v47 = vmax.f32 %v281_v43, 0.0  ;;  %v351_v48 = vmax.f32 %v313_v44, 0.0  ;;  %v284_v49 = vadd.f32 %v530_v45, %v748_v34  ;;  %v316_v50 = vadd.f32 %v554_v46, %v748_v34 }
  0xfd   :  { %v493_v51 = vpack.c.bf16 %v343_v47, %v343_v47  ;;  %v501_v52 = vpack.c.bf16 %v351_v48, %v351_v48  ;;  %v344_v53 = vmax.f32 %v284_v49, 0.0  ;;  %v352_v54 = vmax.f32 %v316_v50, 0.0  ;;  %v531_v55 = vpop.f32.mrb[4].mxu0  ;;  %v555_v56 = vpop.f32.mrb[4].mxu1 }
  0xfe   :  { %v532_v57 = vpop.f32.mrb[5].mxu0  ;;  %v556_v58 = vpop.f32.mrb[5].mxu1 }
  0xff   :  { %424 = vst.msk [vmem:[%s833_s3] sm:$0xf] %vm423_vm0, %v493_v51  ;;  %432 = vst.msk [vmem:[%s833_s3 + $0x20] sm:$0xf] %vm423_vm0, %v501_v52  ;;  %v494_v59 = vpack.c.bf16 %v344_v53, %v344_v53  ;;  %v502_v60 = vpack.c.bf16 %v352_v54, %v352_v54  ;;  %v533_v61 = vadd.f32 %v532_v57, %v531_v55  ;;  %v534_v63 = vpop.f32.mrb[6].mxu0  ;;  %v558_v0 = vpop.f32.mrb[6].mxu1 }
 0x100   :  { %v557_v62 = vadd.f32 %v556_v58, %v555_v56  ;;  %v535_v1 = vpop.f32.mrb[7].mxu0  ;;  %v559_v2 = vpop.f32.mrb[7].mxu1 }
 0x101   :  { %425 = vst.msk [vmem:[%s833_s3 + $0x4] sm:$0xf] %vm423_vm0, %v494_v59  ;;  %433 = vst.msk [vmem:[%s833_s3 + $0x24] sm:$0xf] %vm423_vm0, %v502_v60  ;;  %v289_v3 = vadd.f32 %v533_v61, %v748_v34  ;;  %v536_v5 = vadd.f32 %v535_v1, %v534_v63  ;;  %v560_v6 = vadd.f32 %v559_v2, %v558_v0 }
 0x102   :  { %v321_v4 = vadd.f32 %v557_v62, %v748_v34 }
 0x103   :  { %v345_v7 = vmax.f32 %v289_v3, 0.0  ;;  %v292_v9 = vadd.f32 %v536_v5, %v748_v34  ;;  %v324_v10 = vadd.f32 %v560_v6, %v748_v34 }
 0x104   :  { %v353_v8 = vmax.f32 %v321_v4, 0.0 }
 0x105   :  { %v495_v11 = vpack.c.bf16 %v345_v7, %v345_v7  ;;  %v346_v13 = vmax.f32 %v292_v9, 0.0  ;;  %v354_v14 = vmax.f32 %v324_v10, 0.0  ;;  %v537_v15 = vpop.f32.mrb[8].mxu0  ;;  %v561_v16 = vpop.f32.mrb[8].mxu1 }
 0x106   :  { %v503_v12 = vpack.c.bf16 %v353_v8, %v353_v8  ;;  %v538_v17 = vpop.f32.mrb[9].mxu0  ;;  %v562_v18 = vpop.f32.mrb[9].mxu1 }
 0x107   :  { %426 = vst.msk [vmem:[%s833_s3 + $0x8] sm:$0xf] %vm423_vm0, %v495_v11  ;;  %v496_v19 = vpack.c.bf16 %v346_v13, %v346_v13  ;;  %v504_v20 = vpack.c.bf16 %v354_v14, %v354_v14  ;;  %v539_v21 = vadd.f32 %v538_v17, %v537_v15  ;;  %v563_v22 = vadd.f32 %v562_v18, %v561_v16  ;;  %v540_v23 = vpop.f32.mrb[10].mxu0  ;;  %v564_v24 = vpop.f32.mrb[10].mxu1 }
 0x108   :  { %434 = vst.msk [vmem:[%s833_s3 + $0x28] sm:$0xf] %vm423_vm0, %v503_v12  ;;  %v541_v25 = vpop.f32.mrb[11].mxu0  ;;  %v565_v26 = vpop.f32.mrb[11].mxu1 }
 0x109   :  { %427 = vst.msk [vmem:[%s833_s3 + $0xc] sm:$0xf] %vm423_vm0, %v496_v19  ;;  %435 = vst.msk [vmem:[%s833_s3 + $0x2c] sm:$0xf] %vm423_vm0, %v504_v20  ;;  %v297_v27 = vadd.f32 %v539_v21, %v748_v34  ;;  %v329_v28 = vadd.f32 %v563_v22, %v748_v34  ;;  %v542_v29 = vadd.f32 %v541_v25, %v540_v23 }
 0x10a   :  { %v566_v30 = vadd.f32 %v565_v26, %v564_v24 }
 0x10b   :  { %v347_v31 = vmax.f32 %v297_v27, 0.0  ;;  %v355_v32 = vmax.f32 %v329_v28, 0.0  ;;  %v300_v33 = vadd.f32 %v542_v29, %v748_v34 }
 0x10c   :  { %v332_v35 = vadd.f32 %v566_v30, %v748_v34 }
 0x10d   :  { %v497_v36 = vpack.c.bf16 %v347_v31, %v347_v31  ;;  %v505_v37 = vpack.c.bf16 %v355_v32, %v355_v32  ;;  %v348_v38 = vmax.f32 %v300_v33, 0.0  ;;  %v543_v40 = vpop.f32.mrb[12].mxu0  ;;  %v567_v41 = vpop.f32.mrb[12].mxu1 }
 0x10e   :  { %v356_v39 = vmax.f32 %v332_v35, 0.0  ;;  %v544_v42 = vpop.f32.mrb[13].mxu0  ;;  %v568_v43 = vpop.f32.mrb[13].mxu1 }
 0x10f   :  { %428 = vst.msk [vmem:[%s833_s3 + $0x10] sm:$0xf] %vm423_vm0, %v497_v36  ;;  %436 = vst.msk [vmem:[%s833_s3 + $0x30] sm:$0xf] %vm423_vm0, %v505_v37  ;;  %v498_v44 = vpack.c.bf16 %v348_v38, %v348_v38  ;;  %v545_v46 = vadd.f32 %v544_v42, %v543_v40  ;;  %v569_v47 = vadd.f32 %v568_v43, %v567_v41  ;;  %v546_v48 = vpop.f32.mrb[14].mxu0  ;;  %v570_v49 = vpop.f32.mrb[14].mxu1 }
 0x110   :  { %v506_v45 = vpack.c.bf16 %v356_v39, %v356_v39  ;;  %v547_v50 = vpop.f32.mrb[15].mxu0  ;;  %v571_v51 = vpop.f32.mrb[15].mxu1 }
 0x111   :  { %429 = vst.msk [vmem:[%s833_s3 + $0x14] sm:$0xf] %vm423_vm0, %v498_v44  ;;  %v305_v52 = vadd.f32 %v545_v46, %v748_v34  ;;  %v337_v53 = vadd.f32 %v569_v47, %v748_v34  ;;  %v548_v54 = vadd.f32 %v547_v50, %v546_v48  ;;  %v572_v55 = vadd.f32 %v571_v51, %v570_v49 }
 0x112   :  { %437 = vst.msk [vmem:[%s833_s3 + $0x34] sm:$0xf] %vm423_vm0, %v506_v45 }
 0x113   :  { %v349_v56 = vmax.f32 %v305_v52, 0.0  ;;  %v357_v57 = vmax.f32 %v337_v53, 0.0  ;;  %v308_v58 = vadd.f32 %v548_v54, %v748_v34  ;;  %v340_v59 = vadd.f32 %v572_v55, %v748_v34 }
 0x115   :  { %v499_v60 = vpack.c.bf16 %v349_v56, %v349_v56  ;;  %v507_v61 = vpack.c.bf16 %v357_v57, %v357_v57  ;;  %v350_v62 = vmax.f32 %v308_v58, 0.0  ;;  %v358_v63 = vmax.f32 %v340_v59, 0.0 }
 0x117   :  { %430 = vst.msk [vmem:[%s833_s3 + $0x18] sm:$0xf] %vm423_vm0, %v499_v60  ;;  %438 = vst.msk [vmem:[%s833_s3 + $0x38] sm:$0xf] %vm423_vm0, %v507_v61  ;;  %v500_v0 = vpack.c.bf16 %v350_v62, %v350_v62  ;;  %v508_v1 = vpack.c.bf16 %v358_v63, %v358_v63 }
 0x119   :  { %431 = vst.msk [vmem:[%s833_s3 + $0x1c] sm:$0xf] %vm423_vm0, %v500_v0  ;;  %439 = vst.msk [vmem:[%s833_s3 + $0x3c] sm:$0xf] %vm423_vm0, %v508_v1 }

// kernel: dqn_forward.5
= control target key start
LH: loop header
LB: loop body
LE: loop exit
PB: predicated region body
PF: predicated region fallthrough
CT: control target
= control target key end

     0   :  { %vm430_vm0 = vcmask 519168   ;;  %vm433_vm1 = vcmask 516096   ;;  %s730_s1 = inlined_call_operand.vmem [shape: bf16[512,64], index: 1, kind: input, shape index: {}]   ;;  %s731_s0 = inlined_call_operand.vmem [shape: bf16[18,512], index: 0, kind: input, shape index: {}]   ;;  %s732_s2 = inlined_call_operand.vmem [shape: f32[1,64], index: 2, kind: input, shape index: {}]   ;;  %s733_s3 = inlined_call_operand.vmem [shape: bf16[18,64], index: 3, kind: output, shape index: {}]  }
   0x1   :  { %v542_v0 = vld [vmem:[%s730_s1 + $0x40] sm:$0xff]   ;;  %v546_v4 = vld [vmem:[%s730_s1 + $0x48] sm:$0xff]   ;;  %v550_v8 = vld [vmem:[%s730_s1 + $0x50] sm:$0xff]  }
   0x2   :  { %v543_v1 = vld [vmem:[%s730_s1 + $0xc0] sm:$0xff]   ;;  %486 = vmatprep.subr.bf16.mxu0 %v542_v0  ;;  %v547_v5 = vld [vmem:[%s730_s1 + $0xc8] sm:$0xff]   ;;  %v551_v9 = vld [vmem:[%s730_s1 + $0xd0] sm:$0xff]  }
   0x3   :  { %v544_v2 = vld [vmem:[%s730_s1] sm:$0xff]   ;;  %514 = vmatprep.subr.bf16.mxu1 %v543_v1  ;;  %v548_v6 = vld [vmem:[%s730_s1 + $0x8] sm:$0xff]   ;;  %v552_v10 = vld [vmem:[%s730_s1 + $0x10] sm:$0xff]  }
   0x4   :  { %v545_v3 = vld [vmem:[%s730_s1 + $0x80] sm:$0xff]   ;;  %487 = vmatpush3.bf16.msra.mxu0 %v544_v2  ;;  %v549_v7 = vld [vmem:[%s730_s1 + $0x88] sm:$0xff]   ;;  %v553_v11 = vld [vmem:[%s730_s1 + $0x90] sm:$0xff]  }
   0x5   :  { %515 = vmatpush3.bf16.msra.mxu1 %v545_v3  ;;  %488 = vmatprep.subr.bf16.mxu0 %v546_v4  ;;  %v554_v12 = vld [vmem:[%s730_s1 + $0x58] sm:$0xff]   ;;  %v558_v16 = vld [vmem:[%s730_s1 + $0x60] sm:$0xff]   ;;  %v562_v20 = vld [vmem:[%s730_s1 + $0x68] sm:$0xff]  }
   0x6   :  { %516 = vmatprep.subr.bf16.mxu1 %v547_v5  ;;  %v555_v13 = vld [vmem:[%s730_s1 + $0xd8] sm:$0xff]   ;;  %v559_v17 = vld [vmem:[%s730_s1 + $0xe0] sm:$0xff]   ;;  %v563_v21 = vld [vmem:[%s730_s1 + $0xe8] sm:$0xff]  }
   0x7   :  { %v556_v14 = vld [vmem:[%s730_s1 + $0x18] sm:$0xff]   ;;  %v560_v18 = vld [vmem:[%s730_s1 + $0x20] sm:$0xff]   ;;  %v564_v22 = vld [vmem:[%s730_s1 + $0x28] sm:$0xff]  }
   0x8   :  { %489 = vmatpush3.bf16.msra.mxu0 %v548_v6  ;;  %v557_v15 = vld [vmem:[%s730_s1 + $0x98] sm:$0xff]   ;;  %v561_v19 = vld [vmem:[%s730_s1 + $0xa0] sm:$0xff]   ;;  %v565_v23 = vld [vmem:[%s730_s1 + $0xa8] sm:$0xff]  }
   0x9   :  { %517 = vmatpush3.bf16.msra.mxu1 %v549_v7  ;;  %490 = vmatprep.subr.bf16.mxu0 %v550_v8  ;;  %v566_v24 = vld [vmem:[%s730_s1 + $0x70] sm:$0xff]   ;;  %v570_v28 = vld [vmem:[%s730_s1 + $0x78] sm:$0xff]   ;;  %v19_v36 = vld [vmem:[%s731_s0 + $0x20] sm:$0x11] }
   0xa   :  { %518 = vmatprep.subr.bf16.mxu1 %v551_v9  ;;  %v567_v25 = vld [vmem:[%s730_s1 + $0xf0] sm:$0xff]   ;;  %v571_v29 = vld [vmem:[%s730_s1 + $0xf8] sm:$0xff]   ;;  %v445_v37 = vcombine.high %v19_v36, %v19_v36  ;;  %v20_v38 = vld [vmem:[%s731_s0 + $0x28] sm:$0x11]  ;;  %v444_v40 = vcombine.low %v19_v36, %v19_v36 }
   0xb   :  { %v568_v26 = vld [vmem:[%s730_s1 + $0x30] sm:$0xff]   ;;  %v572_v30 = vld [vmem:[%s730_s1 + $0x38] sm:$0xff]   ;;  %v447_v39 = vcombine.high %v20_v38, %v20_v38  ;;  %v446_v41 = vcombine.low %v20_v38, %v20_v38  ;;  %v439_v44 = vld [vmem:[%s732_s2] ss:$0 sm:$0xff] }
   0xc   :  { %491 = vmatpush3.bf16.msra.mxu0 %v552_v10  ;;  %v569_v27 = vld [vmem:[%s730_s1 + $0xb0] sm:$0xff]   ;;  %v573_v31 = vld [vmem:[%s730_s1 + $0xb8] sm:$0xff]  }
   0xd   :  { %519 = vmatpush3.bf16.msra.mxu1 %v553_v11  ;;  %492 = vmatprep.subr.bf16.mxu0 %v554_v12  ;;  %v574_v32 = vld [vmem:[%s731_s0] ss:$16 sps:$4 sm:$0xff]   ;;  %v576_v33 = vld [vmem:[%s731_s0 + $0x4] ss:$16 sps:$4 sm:$0xff]   ;;  %v577_v34 = vld [vmem:[%s731_s0 + $0x8] ss:$16 sps:$4 sm:$0xff]  }
   0xe   :  { %520 = vmatprep.subr.bf16.mxu1 %v555_v13  ;;  %v579_v35 = vld [vmem:[%s731_s0 + $0xc] ss:$16 sps:$4 sm:$0xff]   ;;  %350 = vmatprep.mubr.bf16.mxu0 %v576_v33 }
   0xf   :  { %398 = vmatprep.mubr.bf16.mxu1 %v579_v35 }
  0x10   :  { %493 = vmatpush3.bf16.msra.mxu0 %v556_v14 }
  0x11   :  { %521 = vmatpush3.bf16.msra.mxu1 %v557_v15  ;;  %494 = vmatprep.subr.bf16.mxu0 %v558_v16 }
  0x12   :  { %522 = vmatprep.subr.bf16.mxu1 %v559_v17 }
  0x14   :  { %495 = vmatpush3.bf16.msra.mxu0 %v560_v18 }
  0x15   :  { %523 = vmatpush3.bf16.msra.mxu1 %v561_v19  ;;  %496 = vmatprep.subr.bf16.mxu0 %v562_v20 }
  0x16   :  { %524 = vmatprep.subr.bf16.mxu1 %v563_v21 }
  0x18   :  { %497 = vmatpush3.bf16.msra.mxu0 %v564_v22 }
  0x19   :  { %525 = vmatpush3.bf16.msra.mxu1 %v565_v23  ;;  %498 = vmatprep.subr.bf16.mxu0 %v566_v24 }
  0x1a   :  { %526 = vmatprep.subr.bf16.mxu1 %v567_v25 }
  0x1c   :  { %499 = vmatpush3.bf16.msra.mxu0 %v568_v26 }
  0x1d   :  { %527 = vmatpush3.bf16.msra.mxu1 %v569_v27  ;;  %500 = vmatprep.subr.bf16.mxu0 %v570_v28 }
  0x1e   :  { %528 = vmatprep.subr.bf16.mxu1 %v571_v29 }
  0x20   :  { %501 = vmatpush3.bf16.msra.mxu0 %v572_v30 }
  0x21   :  { %529 = vmatpush3.bf16.msra.mxu1 %v573_v31 }
  0x23   :  { %351 = vmatmul.mubr.bf16.vlgmr.msra.gmra.mrb[0].mxu0 %v574_v32 }
  0x24   :  { %399 = vmatmul.mubr.bf16.vlgmr.msra.gmra.mrb[0].mxu1 %v577_v34  ;;  %358 = vmatprep.mubr.bf16.mxu0 %v445_v37 }
  0x25   :  { %406 = vmatprep.mubr.bf16.mxu1 %v447_v39 }
  0x2b   :  { %359 = vmatmul.mubr.bf16.gmra.mrb[4].mxu0 %v444_v40 }
  0x2c   :  { %407 = vmatmul.mubr.bf16.gmra.mrb[4].mxu1 %v446_v41 }
  0xf6   :  { %v502_v42 = vpop.f32.mrb[0].mxu0 }
  0xf7   :  { %v530_v43 = vpop.f32.mrb[0].mxu1  ;;  %v503_v45 = vpop.f32.mrb[1].mxu0 }
  0xf8   :  { %v504_v46 = vadd.f32 %v503_v45, %v502_v42  ;;  %v531_v47 = vpop.f32.mrb[1].mxu1  ;;  %v505_v48 = vpop.f32.mrb[2].mxu0 }
  0xf9   :  { %v532_v49 = vadd.f32 %v531_v47, %v530_v43  ;;  %v533_v50 = vpop.f32.mrb[2].mxu1  ;;  %v506_v51 = vpop.f32.mrb[3].mxu0 }
  0xfa   :  { %v353_v52 = vadd.f32 %v504_v46, %v439_v44  ;;  %v507_v53 = vadd.f32 %v506_v51, %v505_v48  ;;  %v534_v54 = vpop.f32.mrb[3].mxu1 }
  0xfb   :  { %v535_v55 = vadd.f32 %v534_v54, %v533_v50 }
  0xfc   :  { %v401_v56 = vadd.f32 %v532_v49, %v353_v52  ;;  %v356_v57 = vadd.f32 %v507_v53, %v439_v44 }
  0xfe   :  { %v414_v58 = vmax.f32 %v401_v56, 0.0  ;;  %v404_v59 = vadd.f32 %v535_v55, %v356_v57  ;;  %v508_v60 = vpop.f32.mrb[4].mxu0 }
  0xff   :  { %v536_v61 = vpop.f32.mrb[4].mxu1  ;;  %v509_v62 = vpop.f32.mrb[5].mxu0 }
 0x100   :  { %v483_v63 = vpack.c.bf16 %v414_v58, %v414_v58  ;;  %v415_v0 = vmax.f32 %v404_v59, 0.0  ;;  %v510_v1 = vadd.f32 %v509_v62, %v508_v60  ;;  %v537_v2 = vpop.f32.mrb[5].mxu1  ;;  %v511_v3 = vpop.f32.mrb[6].mxu0 }
 0x101   :  { %v538_v4 = vadd.f32 %v537_v2, %v536_v61  ;;  %v539_v5 = vpop.f32.mrb[6].mxu1  ;;  %v512_v6 = vpop.f32.mrb[7].mxu0 }
 0x102   :  { %431 = vst.msk [vmem:[%s733_s3] sm:$0xf] %vm430_vm0, %v483_v63  ;;  %v484_v7 = vpack.c.bf16 %v415_v0, %v415_v0  ;;  %v361_v8 = vadd.f32 %v510_v1, %v439_v44  ;;  %v540_v9 = vpop.f32.mrb[7].mxu1 }
 0x104   :  { %432 = vst.msk [vmem:[%s733_s3 + $0x4] sm:$0xf] %vm430_vm0, %v484_v7  ;;  %v409_v10 = vadd.f32 %v538_v4, %v361_v8 }
 0x106   :  { %v416_v11 = vmax.f32 %v409_v10, 0.0 }
 0x108   :  { %v485_v12 = vpack.c.bf16 %v416_v11, %v416_v11 }
 0x10a   :  { %434 = vst.msk [vmem:[%s733_s3 + $0x8] sm:$0x1] %vm433_vm1, %v485_v12 }

// kernel: dqn_forward.6
= control target key start
LH: loop header
LB: loop body
LE: loop exit
PB: predicated region body
PF: predicated region fallthrough
CT: control target
= control target key end

     0   :  { %v626_v21 = vmov 1966171168   ;;  %v100_v23 = vlaneseq  ;;  %v627_v40 = vmov 0.0   ;;  %vm628_vm0 = vmmov 0   ;;  %s766_s1 = inlined_call_operand.vmem [shape: bf16[576,64], index: 1, kind: input, shape index: {}]   ;;  %s767_s0 = inlined_call_operand.vmem [shape: bf16[2,576], index: 0, kind: input, shape index: {}]   ;;  %s768_s2 = inlined_call_operand.vmem [shape: f32[1,64], index: 2, kind: input, shape index: {}]   ;;  %s769_s3 = inlined_call_operand.vmem [shape: bf16[2,64], index: 3, kind: output, shape index: {}]  }
   0x1   :  { %v589_v0 = vld [vmem:[%s766_s1 + $0x40] sm:$0xff]   ;;  %v593_v4 = vld [vmem:[%s766_s1 + $0x48] sm:$0xff]   ;;  %v597_v8 = vld [vmem:[%s766_s1 + $0x50] sm:$0xff]   ;;  %v98_v22 = vunpack.c.l.s4 %v626_v21  ;;  %vm355_vm1 = vcmask 523264   ;;  %vm481_vm2 = vcmask 516096  }
   0x2   :  { %v590_v1 = vld [vmem:[%s766_s1] sm:$0xff]   ;;  %525 = vmatprep.subr.bf16.mxu0 %v589_v0  ;;  %v594_v5 = vld [vmem:[%s766_s1 + $0x8] sm:$0xff]   ;;  %v598_v9 = vld [vmem:[%s766_s1 + $0x10] sm:$0xff]   ;;  %v101_v29 = vshrl.u32 %v100_v23, 7 }
   0x3   :  { %v591_v2 = vld [vmem:[%s766_s1 + $0xc0] sm:$0xff]   ;;  %526 = vmatpush3.bf16.msra.mxu0 %v590_v1  ;;  %v595_v6 = vld [vmem:[%s766_s1 + $0xc8] sm:$0xff]   ;;  %v599_v10 = vld [vmem:[%s766_s1 + $0xd0] sm:$0xff]   ;;  %v99_v28 = vunpack.c.0.s8 %v98_v22 }
   0x4   :  { %v592_v3 = vld [vmem:[%s766_s1 + $0x80] sm:$0xff]   ;;  %547 = vmatprep.subr.bf16.mxu1 %v591_v2  ;;  %527 = vmatprep.subr.bf16.mxu0 %v593_v4  ;;  %v596_v7 = vld [vmem:[%s766_s1 + $0x88] sm:$0xff]   ;;  %v600_v11 = vld [vmem:[%s766_s1 + $0x90] sm:$0xff]  }
   0x5   :  { %548 = vmatpush3.bf16.msra.mxu1 %v592_v3  ;;  %v601_v12 = vld [vmem:[%s766_s1 + $0x58] sm:$0xff]   ;;  %v605_v16 = vld [vmem:[%s766_s1 + $0x60] sm:$0xff]   ;;  %v609_v20 = vld [vmem:[%s766_s1 + $0x68] sm:$0xff]   ;;  %v102_v34 = vsub.s32 %v99_v28, %v101_v29 }
   0x6   :  { %549 = vmatprep.subr.bf16.mxu1 %v595_v6  ;;  %v602_v13 = vld [vmem:[%s766_s1 + $0x18] sm:$0xff]   ;;  %v606_v17 = vld [vmem:[%s766_s1 + $0x20] sm:$0xff]   ;;  %v610_v24 = vld [vmem:[%s766_s1 + $0x28] sm:$0xff]  }
   0x7   :  { %528 = vmatpush3.bf16.msra.mxu0 %v594_v5  ;;  %v603_v14 = vld [vmem:[%s766_s1 + $0xd8] sm:$0xff]   ;;  %v607_v18 = vld [vmem:[%s766_s1 + $0xe0] sm:$0xff]   ;;  %v611_v25 = vld [vmem:[%s766_s1 + $0xe8] sm:$0xff]  }
   0x8   :  { %529 = vmatprep.subr.bf16.mxu0 %v597_v8  ;;  %v604_v15 = vld [vmem:[%s766_s1 + $0x98] sm:$0xff]   ;;  %v608_v19 = vld [vmem:[%s766_s1 + $0xa0] sm:$0xff]   ;;  %v612_v26 = vld [vmem:[%s766_s1 + $0xa8] sm:$0xff]  }
   0x9   :  { %550 = vmatpush3.bf16.msra.mxu1 %v596_v7  ;;  %v613_v27 = vld [vmem:[%s766_s1 + $0x70] sm:$0xff]   ;;  %v617_v33 = vld [vmem:[%s766_s1 + $0x78] sm:$0xff]   ;;  %v15_v37 = vld [vmem:[%s767_s0] sm:$0x1f] }
   0xa   :  { %551 = vmatprep.subr.bf16.mxu1 %v599_v10  ;;  %v614_v30 = vld [vmem:[%s766_s1 + $0x30] sm:$0xff]   ;;  %v618_v35 = vld [vmem:[%s766_s1 + $0x38] sm:$0xff]   ;;  %v103_v38 = vrot.slane %v15_v37, %v102_v34  ;;  %v622_v44 = vld [vmem:[%s766_s1 + $0x100] sm:$0xff]   ;;  %v96_v48 = vcombine.high %v15_v37, %v15_v37 }
   0xb   :  { %530 = vmatpush3.bf16.msra.mxu0 %v598_v9  ;;  %v615_v31 = vld [vmem:[%s766_s1 + $0xf0] sm:$0xff]   ;;  %v619_v36 = vld [vmem:[%s766_s1 + $0xf8] sm:$0xff]   ;;  %v623_v47 = vld [vmem:[%s766_s1 + $0x108] sm:$0xff]  }
   0xc   :  { %531 = vmatprep.subr.bf16.mxu0 %v601_v12  ;;  %v616_v32 = vld [vmem:[%s766_s1 + $0xb0] sm:$0xff]   ;;  %v621_v39 = vld [vmem:[%s766_s1 + $0xb8] sm:$0xff]   ;;  %v111_v41 = vcombine.high %v103_v38, %v103_v38  ;;  %v118_v42 = vrot.slane %v103_v38, %v102_v34  ;;  %v110_v50 = vrot.slane %v96_v48, %v102_v34  ;;  %v487_v54 = vld [vmem:[%s768_s2] ss:$0 sm:$0xff] }
   0xd   :  { %552 = vmatpush3.bf16.msra.mxu1 %v600_v11  ;;  %v624_v49 = vld [vmem:[%s766_s1 + $0x110] sm:$0xff]   ;;  %v625_v51 = vld [vmem:[%s766_s1 + $0x118] sm:$0xff]  }
   0xe   :  { %553 = vmatprep.subr.bf16.mxu1 %v603_v14  ;;  %v132_v43 = vrot.slane %v111_v41, %v102_v34  ;;  %v133_v45 = vcombine.high %v118_v42, %v118_v42  ;;  %v125_v52 = vrot.slane %v110_v50, %v102_v34 }
   0xf   :  { %532 = vmatpush3.bf16.msra.mxu0 %v602_v13 }
  0x10   :  { %533 = vmatprep.subr.bf16.mxu0 %v605_v16  ;;  %391 = vmatprep.mubr.bf16.mxu0 %v132_v43  ;;  %v134_v46 = vcombine.high %v132_v43, %v132_v43 }
  0x11   :  { %554 = vmatpush3.bf16.msra.mxu1 %v604_v15 }
  0x12   :  { %555 = vmatprep.subr.bf16.mxu1 %v607_v18  ;;  %431 = vmatprep.mubr.bf16.mxu1 %v134_v46 }
  0x13   :  { %534 = vmatpush3.bf16.msra.mxu0 %v606_v17 }
  0x14   :  { %535 = vmatprep.subr.bf16.mxu0 %v609_v20 }
  0x15   :  { %556 = vmatpush3.bf16.msra.mxu1 %v608_v19 }
  0x16   :  { %557 = vmatprep.subr.bf16.mxu1 %v611_v25 }
  0x17   :  { %536 = vmatpush3.bf16.msra.mxu0 %v610_v24 }
  0x18   :  { %537 = vmatprep.subr.bf16.mxu0 %v613_v27 }
  0x19   :  { %558 = vmatpush3.bf16.msra.mxu1 %v612_v26 }
  0x1a   :  { %559 = vmatprep.subr.bf16.mxu1 %v615_v31 }
  0x1b   :  { %538 = vmatpush3.bf16.msra.mxu0 %v614_v30 }
  0x1c   :  { %539 = vmatprep.subr.bf16.mxu0 %v617_v33 }
  0x1d   :  { %560 = vmatpush3.bf16.msra.mxu1 %v616_v32 }
  0x1e   :  { %561 = vmatprep.subr.bf16.mxu1 %v619_v36 }
  0x1f   :  { %540 = vmatpush3.bf16.msra.mxu0 %v618_v35 }
  0x20   :  { %574 = vmatprep.subr.bf16.mxu0 %v627_v40 }
  0x21   :  { %562 = vmatpush3.bf16.msra.mxu1 %v621_v39 }
  0x22   :  { %392 = vmatmul.mubr.bf16.vlgmr.msra.gmra.mrb[0].mxu0 %v118_v42 }
  0x23   :  { %575 = vmatpush3.bf16.msra.mxu0 %v622_v44  ;;  %582 = vmatprep.mubr.msk.bf16.mxu0 %vm628_vm0, %v627_v40 }
  0x24   :  { %432 = vmatmul.mubr.bf16.vlgmr.msra.gmra.mrb[0].mxu1 %v133_v45  ;;  %576 = vmatprep.subr.bf16.mxu0 %v627_v40 }
  0x27   :  { %577 = vmatpush3.bf16.msra.mxu0 %v623_v47 }
  0x28   :  { %578 = vmatprep.subr.bf16.mxu0 %v627_v40 }
  0x2b   :  { %579 = vmatpush3.bf16.msra.mxu0 %v624_v49 }
  0x2c   :  { %580 = vmatprep.subr.bf16.mxu0 %v627_v40 }
  0x2f   :  { %581 = vmatpush3.bf16.msra.mxu0 %v625_v51 }
  0x32   :  { %583 = vmatmul.mubr.msk.bf16.vlgmr.msra.gmra.mrb[4].mxu0 %vm355_vm1, %v125_v52 }
  0xf5   :  { %v541_v53 = vpop.f32.mrb[0].mxu0 }
  0xf6   :  { %v542_v55 = vpop.f32.mrb[1].mxu0 }
  0xf7   :  { %v543_v56 = vadd.f32 %v542_v55, %v541_v53  ;;  %v544_v57 = vpop.f32.mrb[2].mxu0  ;;  %v563_v58 = vpop.f32.mrb[0].mxu1 }
  0xf8   :  { %v545_v59 = vpop.f32.mrb[3].mxu0  ;;  %v564_v60 = vpop.f32.mrb[1].mxu1 }
  0xf9   :  { %v394_v61 = vadd.f32 %v543_v56, %v487_v54  ;;  %v565_v62 = vadd.f32 %v564_v60, %v563_v58  ;;  %v566_v63 = vpop.f32.mrb[2].mxu1 }
  0xfa   :  { %v567_v0 = vpop.f32.mrb[3].mxu1 }
  0xfb   :  { %v434_v1 = vadd.f32 %v565_v62, %v394_v61 }
 0x105   :  { %v473_v2 = vpop.f32.mrb[4].mxu0 }
 0x106   :  { %v474_v3 = vadd.f32 %v473_v2, %v434_v1  ;;  %v584_v4 = vpop.f32.mrb[5].mxu0 }
 0x107   :  { %v476_v5 = vpop.f32.mrb[6].mxu0 }
 0x108   :  { %v479_v6 = vmax.f32 %v474_v3, 0.0  ;;  %v585_v7 = vpop.f32.mrb[7].mxu0 }
 0x10a   :  { %v480_v8 = vpack.c.bf16 %v479_v6, %v479_v6 }
 0x10c   :  { %482 = vst.msk [vmem:[%s769_s3] sm:$0x1] %vm481_vm2, %v480_v8 }

// kernel: dqn_forward.7
= control target key start
LH: loop header
LB: loop body
LE: loop exit
PB: predicated region body
PF: predicated region fallthrough
CT: control target
= control target key end

     0   :  { %v1437_v8 = vmov 0   ;;  %vm257_vm0 = vcmask 523264   ;;  %s1809_s0 = inlined_call_operand.vmem [shape: bf16[2,64], index: 0, kind: input, shape index: {}]   ;;  %s1810_s1 = inlined_call_operand.vmem [shape: bf16[64,1024], index: 1, kind: input, shape index: {}]   ;;  %s1811_s2 = inlined_call_operand.vmem [shape: f32[1,1024], index: 2, kind: input, shape index: {}]   ;;  %s1812_s3 = inlined_call_operand.vmem [shape: bf16[1024,7], index: 3, kind: input, shape index: {}]   ;;  %s1813_s4 = inlined_call_operand.vmem [shape: f32[1,7], index: 4, kind: input, shape index: {}]   ;;  %s1814_s5 = inlined_call_operand.hbm [shape: f32[2,6], index: 5, kind: output, shape index: {}]  }
   0x1   :  { %v23_v0 = vld [vmem:[%s1810_s1] sm:$0xff]  ;;  %v24_v2 = vld [vmem:[%s1810_s1 + $0x8] sm:$0xff]  ;;  %293 = vmatprep.mubr.bf16.mxu0 %v1437_v8  ;;  %334 = vmatprep.mubr.bf16.mxu1 %v1437_v8  ;;  %v25_v31 = vld [vmem:[%s1810_s1 + $0x10] sm:$0xff] }
   0x2   :  { %v27_v1 = vld [vmem:[%s1810_s1 + $0x20] sm:$0xff]  ;;  %v28_v4 = vld [vmem:[%s1810_s1 + $0x28] sm:$0xff]  ;;  %1347 = vset.pattern.permute.xlu1 %v1437_v8  ;;  %1348 = vset.pattern.permute.xlu0 %v1437_v8  ;;  %v29_v32 = vld [vmem:[%s1810_s1 + $0x30] sm:$0xff] }
   0x3   :  { %v1156_v3 = vcombine.high %v23_v0, %v27_v1  ;;  %v1155_v5 = vcombine.low %v23_v0, %v27_v1  ;;  %v31_v6 = vld [vmem:[%s1810_s1 + $0x40] sm:$0xff]  ;;  %v1158_v9 = vcombine.high %v24_v2, %v28_v4  ;;  %v1157_v10 = vcombine.low %v24_v2, %v28_v4  ;;  %v32_v12 = vld [vmem:[%s1810_s1 + $0x48] sm:$0xff]  ;;  %v26_v33 = vld [vmem:[%s1810_s1 + $0x18] sm:$0xff] }
   0x4   :  { %v35_v7 = vld [vmem:[%s1810_s1 + $0x60] sm:$0xff]  ;;  %v36_v13 = vld [vmem:[%s1810_s1 + $0x68] sm:$0xff]  ;;  %v30_v34 = vld [vmem:[%s1810_s1 + $0x38] sm:$0xff]  ;;  %v1160_v38 = vcombine.high %v25_v31, %v29_v32  ;;  %v1159_v44 = vcombine.low %v25_v31, %v29_v32 }
   0x5   :  { %v1164_v11 = vcombine.high %v31_v6, %v35_v7  ;;  %v39_v14 = vld [vmem:[%s1810_s1 + $0x80] sm:$0xff]  ;;  %261 = vmatprep.subr.bf16.mxu0 %v1156_v3  ;;  %v1166_v15 = vcombine.high %v32_v12, %v36_v13  ;;  %v40_v17 = vld [vmem:[%s1810_s1 + $0x88] sm:$0xff]  ;;  %302 = vmatprep.subr.bf16.mxu1 %v1158_v9  ;;  %v1163_v19 = vcombine.low %v31_v6, %v35_v7  ;;  %v33_v36 = vld [vmem:[%s1810_s1 + $0x50] sm:$0xff] }
   0x6   :  { %v43_v16 = vld [vmem:[%s1810_s1 + $0xa0] sm:$0xff]  ;;  %v44_v18 = vld [vmem:[%s1810_s1 + $0xa8] sm:$0xff]  ;;  %262 = vmatpush1.bf16.msra.mxu0 %v1155_v5  ;;  %303 = vmatpush1.bf16.msra.mxu1 %v1157_v10  ;;  %v1165_v20 = vcombine.low %v32_v12, %v36_v13  ;;  %v37_v39 = vld [vmem:[%s1810_s1 + $0x70] sm:$0xff]  ;;  %v1162_v41 = vcombine.high %v26_v33, %v30_v34  ;;  %v1161_v46 = vcombine.low %v26_v33, %v30_v34 }
   0x7   :  { %263 = vmatprep.subr.bf16.mxu0 %v1164_v11  ;;  %v1172_v21 = vcombine.high %v39_v14, %v43_v16  ;;  %304 = vmatprep.subr.bf16.mxu1 %v1166_v15  ;;  %v1174_v22 = vcombine.high %v40_v17, %v44_v18  ;;  %v47_v23 = vld [vmem:[%s1810_s1 + $0xc0] sm:$0xff]  ;;  %v48_v25 = vld [vmem:[%s1810_s1 + $0xc8] sm:$0xff]  ;;  %v1171_v27 = vcombine.low %v39_v14, %v43_v16  ;;  %v34_v42 = vld [vmem:[%s1810_s1 + $0x58] sm:$0xff] }
   0x8   :  { %v51_v24 = vld [vmem:[%s1810_s1 + $0xe0] sm:$0xff]  ;;  %v52_v26 = vld [vmem:[%s1810_s1 + $0xe8] sm:$0xff]  ;;  %v1173_v28 = vcombine.low %v40_v17, %v44_v18  ;;  %v38_v43 = vld [vmem:[%s1810_s1 + $0x78] sm:$0xff]  ;;  %v1168_v47 = vcombine.high %v33_v36, %v37_v39  ;;  %v1167_v52 = vcombine.low %v33_v36, %v37_v39 }
   0x9   :  { %v1180_v29 = vcombine.high %v47_v23, %v51_v24  ;;  %v1182_v30 = vcombine.high %v48_v25, %v52_v26  ;;  %v1179_v35 = vcombine.low %v47_v23, %v51_v24  ;;  %v1181_v37 = vcombine.low %v48_v25, %v52_v26  ;;  %v22_v40 = vld [vmem:[%s1809_s0] sm:$0x1]  ;;  %v41_v45 = vld [vmem:[%s1810_s1 + $0x90] sm:$0xff]  ;;  %v42_v50 = vld [vmem:[%s1810_s1 + $0x98] sm:$0xff] }
   0xa   :  { %264 = vmatpush1.bf16.msra.mxu0 %v1163_v19  ;;  %305 = vmatpush1.bf16.msra.mxu1 %v1165_v20  ;;  %v45_v48 = vld [vmem:[%s1810_s1 + $0xb0] sm:$0xff]  ;;  %v1170_v49 = vcombine.high %v34_v42, %v38_v43  ;;  %v46_v51 = vld [vmem:[%s1810_s1 + $0xb8] sm:$0xff]  ;;  %v1169_v54 = vcombine.low %v34_v42, %v38_v43  ;;  %v1349_v1 = vld [vmem:[%s1812_s3 + $0x40] sm:$0xff]  }
   0xb   :  { %265 = vmatprep.subr.bf16.mxu0 %v1172_v21  ;;  %306 = vmatprep.subr.bf16.mxu1 %v1174_v22  ;;  %v49_v53 = vld [vmem:[%s1810_s1 + $0xd0] sm:$0xff]  ;;  %v1176_v55 = vcombine.high %v41_v45, %v45_v48  ;;  %v1178_v57 = vcombine.high %v42_v50, %v46_v51  ;;  %v50_v58 = vld [vmem:[%s1810_s1 + $0xd8] sm:$0xff]  ;;  %v1175_v60 = vcombine.low %v41_v45, %v45_v48  ;;  %v1350_v3 = vld [vmem:[%s1812_s3 + $0xc0] sm:$0xff]  }
   0xc   :  { %v53_v56 = vld [vmem:[%s1810_s1 + $0xf0] sm:$0xff]  ;;  %v54_v59 = vld [vmem:[%s1810_s1 + $0xf8] sm:$0xff]  ;;  %v1177_v61 = vcombine.low %v42_v50, %v46_v51  ;;  %v1351_v4 = vld [vmem:[%s1812_s3] sm:$0xff]  }
   0xd   :  { %v1184_v62 = vcombine.high %v49_v53, %v53_v56  ;;  %v1186_v63 = vcombine.high %v50_v58, %v54_v59  ;;  %v1183_v0 = vcombine.low %v49_v53, %v53_v56  ;;  %v1185_v2 = vcombine.low %v50_v58, %v54_v59  ;;  %v1352_v5 = vld [vmem:[%s1812_s3 + $0x80] sm:$0xff]   ;;  %v1353_v6 = vld [vmem:[%s1812_s3 + $0x48] sm:$0xff]   ;;  %v1357_v10 = vld [vmem:[%s1812_s3 + $0x50] sm:$0xff]  }
   0xe   :  { %266 = vmatpush1.bf16.msra.mxu0 %v1171_v27  ;;  %307 = vmatpush1.bf16.msra.mxu1 %v1173_v28  ;;  %v1354_v7 = vld [vmem:[%s1812_s3 + $0xc8] sm:$0xff]   ;;  %v1358_v11 = vld [vmem:[%s1812_s3 + $0xd0] sm:$0xff]   ;;  %v1361_v14 = vld [vmem:[%s1812_s3 + $0x58] sm:$0xff]  }
   0xf   :  { %267 = vmatprep.subr.bf16.mxu0 %v1180_v29  ;;  %308 = vmatprep.subr.bf16.mxu1 %v1182_v30  ;;  %v1356_v9 = vld [vmem:[%s1812_s3 + $0x88] sm:$0xff]   ;;  %v1359_v12 = vld [vmem:[%s1812_s3 + $0x10] sm:$0xff]   ;;  %v1362_v15 = vld [vmem:[%s1812_s3 + $0xd8] sm:$0xff]  }
  0x10   :  { %v1360_v13 = vld [vmem:[%s1812_s3 + $0x90] sm:$0xff]   ;;  %v1363_v16 = vld [vmem:[%s1812_s3 + $0x18] sm:$0xff]   ;;  %v1365_v18 = vld [vmem:[%s1812_s3 + $0x60] sm:$0xff]  }
  0x11   :  { %v1364_v17 = vld [vmem:[%s1812_s3 + $0x98] sm:$0xff]   ;;  %v1366_v19 = vld [vmem:[%s1812_s3 + $0xe0] sm:$0xff]   ;;  %v1369_v22 = vld [vmem:[%s1812_s3 + $0x68] sm:$0xff]  }
  0x12   :  { %268 = vmatpush1.bf16.msra.mxu0 %v1179_v35  ;;  %309 = vmatpush1.bf16.msra.mxu1 %v1181_v37  ;;  %v1367_v20 = vld [vmem:[%s1812_s3 + $0x20] sm:$0xff]   ;;  %v1370_v23 = vld [vmem:[%s1812_s3 + $0xe8] sm:$0xff]  }
  0x13   :  { %343 = vmatprep.subr.bf16.mxu0 %v1160_v38  ;;  %384 = vmatprep.subr.bf16.mxu1 %v1162_v41  ;;  %v1368_v21 = vld [vmem:[%s1812_s3 + $0xa0] sm:$0xff]   ;;  %v1371_v24 = vld [vmem:[%s1812_s3 + $0x28] sm:$0xff]  }
  0x14   :  { %v1372_v25 = vld [vmem:[%s1812_s3 + $0xa8] sm:$0xff]  }
  0x15   :  { %1187 = vmatmul.mubr.msk.bf16.vlgmr.msra.gmra.mrb[0].mxu0 %vm257_vm0, %v22_v40  ;;  %1188 = vmatmul.mubr.msk.bf16.vlgmr.msra.gmra.mrb[0].mxu1 %vm257_vm0, %v22_v40 }
  0x16   :  { %344 = vmatpush1.bf16.msra.mxu0 %v1159_v44  ;;  %385 = vmatpush1.bf16.msra.mxu1 %v1161_v46 }
  0x17   :  { %345 = vmatprep.subr.bf16.mxu0 %v1168_v47  ;;  %386 = vmatprep.subr.bf16.mxu1 %v1170_v49 }
  0x18   :  { %375 = vmatprep.mubr.bf16.mxu0 %v1437_v8  ;;  %416 = vmatprep.mubr.bf16.mxu1 %v1437_v8  ;;  %v1355_v8 = vld [vmem:[%s1812_s3 + $0x8] sm:$0xff]  }
  0x1a   :  { %346 = vmatpush1.bf16.msra.mxu0 %v1167_v52  ;;  %387 = vmatpush1.bf16.msra.mxu1 %v1169_v54 }
  0x1b   :  { %347 = vmatprep.subr.bf16.mxu0 %v1176_v55  ;;  %388 = vmatprep.subr.bf16.mxu1 %v1178_v57 }
  0x1e   :  { %348 = vmatpush1.bf16.msra.mxu0 %v1175_v60  ;;  %389 = vmatpush1.bf16.msra.mxu1 %v1177_v61 }
  0x1f   :  { %349 = vmatprep.subr.bf16.mxu0 %v1184_v62  ;;  %390 = vmatprep.subr.bf16.mxu1 %v1186_v63 }
  0x22   :  { %350 = vmatpush1.bf16.msra.mxu0 %v1183_v0  ;;  %391 = vmatpush1.bf16.msra.mxu1 %v1185_v2 }
  0x23   :  { %1256 = vmatprep.subr.bf16.mxu0 %v1349_v1  ;;  %1278 = vmatprep.subr.bf16.mxu1 %v1350_v3 }
  0x25   :  { %1189 = vmatmul.mubr.msk.bf16.vlgmr.msra.gmra.mrb[4].mxu0 %vm257_vm0, %v22_v40  ;;  %1190 = vmatmul.mubr.msk.bf16.vlgmr.msra.gmra.mrb[4].mxu1 %vm257_vm0, %v22_v40 }
  0x26   :  { %1257 = vmatpush3.bf16.msra.mxu0 %v1351_v4  ;;  %1279 = vmatpush3.bf16.msra.mxu1 %v1352_v5 }
  0x27   :  { %1258 = vmatprep.subr.bf16.mxu0 %v1353_v6  ;;  %1280 = vmatprep.subr.bf16.mxu1 %v1354_v7 }
  0x2a   :  { %1259 = vmatpush3.bf16.msra.mxu0 %v1355_v8  ;;  %1281 = vmatpush3.bf16.msra.mxu1 %v1356_v9 }
  0x2b   :  { %1260 = vmatprep.subr.bf16.mxu0 %v1357_v10  ;;  %1282 = vmatprep.subr.bf16.mxu1 %v1358_v11 }
  0x2e   :  { %1261 = vmatpush3.bf16.msra.mxu0 %v1359_v12  ;;  %1283 = vmatpush3.bf16.msra.mxu1 %v1360_v13 }
  0x2f   :  { %1262 = vmatprep.subr.bf16.mxu0 %v1361_v14  ;;  %1284 = vmatprep.subr.bf16.mxu1 %v1362_v15 }
  0x32   :  { %1263 = vmatpush3.bf16.msra.mxu0 %v1363_v16  ;;  %1285 = vmatpush3.bf16.msra.mxu1 %v1364_v17 }
  0x33   :  { %1264 = vmatprep.subr.bf16.mxu0 %v1365_v18  ;;  %1286 = vmatprep.subr.bf16.mxu1 %v1366_v19 }
  0x36   :  { %1265 = vmatpush3.bf16.msra.mxu0 %v1367_v20  ;;  %1287 = vmatpush3.bf16.msra.mxu1 %v1368_v21 }
  0x37   :  { %1266 = vmatprep.subr.bf16.mxu0 %v1369_v22  ;;  %1288 = vmatprep.subr.bf16.mxu1 %v1370_v23 }
  0x3a   :  { %1267 = vmatpush3.bf16.msra.mxu0 %v1371_v24  ;;  %1289 = vmatpush3.bf16.msra.mxu1 %v1372_v25 }
  0x3b   :  { %10 = vsyncpa [#allocation3], 0  ;;  %v1373_v26 = vld [vmem:[%s1812_s3 + $0x70] sm:$0xff]   ;;  %v1377_v30 = vld [vmem:[%s1812_s3 + $0x78] sm:$0xff]   ;;  %v57_v36 = vlaneseq  ;;  %vm1124_vm1 = vcmask 41984  }
  0x3c   :  { %v1374_v27 = vld [vmem:[%s1812_s3 + $0xf0] sm:$0xff]   ;;  %1268 = vmatprep.subr.bf16.mxu0 %v1373_v26  ;;  %v1378_v31 = vld [vmem:[%s1812_s3 + $0xf8] sm:$0xff]   ;;  %v1381_v34 = vld [vmem:[%s1812_s3 + $0x140] sm:$0xff]  }
  0x3d   :  { %v1375_v28 = vld [vmem:[%s1812_s3 + $0x30] sm:$0xff]   ;;  %1290 = vmatprep.subr.bf16.mxu1 %v1374_v27  ;;  %v1379_v32 = vld [vmem:[%s1812_s3 + $0x38] sm:$0xff]   ;;  %v1382_v35 = vld [vmem:[%s1812_s3 + $0x1c0] sm:$0xff]   ;;  %v1681_v37 = vshrl.u32 %v57_v36, 7 }
  0x3e   :  { %v1376_v29 = vld [vmem:[%s1812_s3 + $0xb0] sm:$0xff]   ;;  %1269 = vmatpush3.bf16.msra.mxu0 %v1375_v28  ;;  %v1380_v33 = vld [vmem:[%s1812_s3 + $0xb8] sm:$0xff]   ;;  %v1687_v39 = vld [vmem:[%s1811_s2] sm:$0xff] }
  0x3f   :  { %1291 = vmatpush3.bf16.msra.mxu1 %v1376_v29  ;;  %1270 = vmatprep.subr.bf16.mxu0 %v1377_v30  ;;  %v59_v38 = vsub.s32 0, %v1681_v37  ;;  %v67_v40 = vsub.s32 2, %v1681_v37  ;;  %v63_v41 = vsub.s32 1, %v1681_v37  ;;  %v71_v42 = vsub.s32 3, %v1681_v37  ;;  %v1383_v1 = vld [vmem:[%s1812_s3 + $0x100] sm:$0xff]   ;;  %v1385_v5 = vld [vmem:[%s1812_s3 + $0x148] sm:$0xff]  }
  0x40   :  { %1292 = vmatprep.subr.bf16.mxu1 %v1378_v31  ;;  %v1384_v4 = vld [vmem:[%s1812_s3 + $0x180] sm:$0xff]   ;;  %v1386_v6 = vld [vmem:[%s1812_s3 + $0x1c8] sm:$0xff]   ;;  %v79_v8 = vsub.s32 5, %v1681_v37  ;;  %v1389_v10 = vld [vmem:[%s1812_s3 + $0x150] sm:$0xff]   ;;  %v87_v11 = vsub.s32 7, %v1681_v37 }
  0x41   :  { %v60_v43 = vrot.slane %v1687_v39, %v59_v38  ;;  %v68_v44 = vrot.slane %v1687_v39, %v67_v40  ;;  %v64_v45 = vrot.slane %v1687_v39, %v63_v41  ;;  %v72_v46 = vrot.slane %v1687_v39, %v71_v42  ;;  %v1387_v7 = vld [vmem:[%s1812_s3 + $0x108] sm:$0xff]   ;;  %v1390_v12 = vld [vmem:[%s1812_s3 + $0x1d0] sm:$0xff]   ;;  %v1393_v16 = vld [vmem:[%s1812_s3 + $0x158] sm:$0xff]  }
  0x42   :  { %1271 = vmatpush3.bf16.msra.mxu0 %v1379_v32  ;;  %v1388_v9 = vld [vmem:[%s1812_s3 + $0x188] sm:$0xff]   ;;  %v1391_v13 = vld [vmem:[%s1812_s3 + $0x110] sm:$0xff]   ;;  %v80_v14 = vrot.slane %v1687_v39, %v79_v8  ;;  %v88_v17 = vrot.slane %v1687_v39, %v87_v11  ;;  %v1394_v18 = vld [vmem:[%s1812_s3 + $0x1d8] sm:$0xff]   ;;  %v83_v38 = vsub.s32 6, %v1681_v37  ;;  %v75_v41 = vsub.s32 4, %v1681_v37 }
  0x43   :  { %1293 = vmatpush3.bf16.msra.mxu1 %v1380_v33  ;;  %1300 = vmatprep.subr.bf16.mxu0 %v1381_v34  ;;  %v1392_v15 = vld [vmem:[%s1812_s3 + $0x190] sm:$0xff]   ;;  %v1395_v22 = vld [vmem:[%s1812_s3 + $0x118] sm:$0xff]   ;;  %v1397_v27 = vld [vmem:[%s1812_s3 + $0x160] sm:$0xff]  }
  0x44   :  { %1322 = vmatprep.subr.bf16.mxu1 %v1382_v35  ;;  %v1396_v26 = vld [vmem:[%s1812_s3 + $0x198] sm:$0xff]   ;;  %v1398_v31 = vld [vmem:[%s1812_s3 + $0x1e0] sm:$0xff]   ;;  %v1401_v42 = vld [vmem:[%s1812_s3 + $0x168] sm:$0xff]   ;;  %v76_v37 = vrot.slane %v1687_v39, %v75_v41 }
  0x45   :  { %v1399_v35 = vld [vmem:[%s1812_s3 + $0x120] sm:$0xff]  }
  0x46   :  { %v1400_v40 = vld [vmem:[%s1812_s3 + $0x1a0] sm:$0xff]  }
  0xe8   :  { %v295_v47 = vpop.f32.mrb[0].mxu0  ;;  %v336_v49 = vpop.f32.mrb[0].mxu1 }
  0xe9   :  { %v296_v48 = vadd.f32 %v295_v47, %v60_v43  ;;  %v297_v50 = vpop.f32.mrb[1].mxu0  ;;  %v337_v51 = vadd.f32 %v336_v49, %v68_v44  ;;  %v338_v53 = vpop.f32.mrb[1].mxu1  ;;  %v1402_v44 = vld [vmem:[%s1812_s3 + $0x1e8] sm:$0xff]   ;;  %v1406_v49 = vld [vmem:[%s1812_s3 + $0x1f0] sm:$0xff]  }
  0xea   :  { %v298_v52 = vadd.f32 %v297_v50, %v64_v45  ;;  %v299_v54 = vpop.f32.mrb[2].mxu0  ;;  %v339_v56 = vadd.f32 %v338_v53, %v72_v46  ;;  %v340_v57 = vpop.f32.mrb[2].mxu1  ;;  %v1403_v45 = vld [vmem:[%s1812_s3 + $0x128] sm:$0xff]   ;;  %v84_v46 = vrot.slane %v1687_v39, %v83_v38  ;;  %v1407_v39 = vld [vmem:[%s1812_s3 + $0x130] sm:$0xff]   ;;  %v1409_v53 = vld [vmem:[%s1812_s3 + $0x178] sm:$0xff]  }
  0xeb   :  { %v425_v55 = vmax.f32 %v296_v48, 0.0  ;;  %v300_v58 = vpop.f32.mrb[3].mxu0  ;;  %v427_v59 = vmax.f32 %v337_v51, 0.0  ;;  %v341_v61 = vpop.f32.mrb[3].mxu1  ;;  %v1404_v47 = vld [vmem:[%s1812_s3 + $0x1a8] sm:$0xff]   ;;  %v1405_v48 = vld [vmem:[%s1812_s3 + $0x170] sm:$0xff]  }
  0xec   :  { %v426_v60 = vmax.f32 %v298_v52, 0.0  ;;  %v428_v62 = vmax.f32 %v339_v56, 0.0  ;;  %v1408_v52 = vld [vmem:[%s1812_s3 + $0x1b0] sm:$0xff]   ;;  %v1410_v54 = vld [vmem:[%s1812_s3 + $0x1f8] sm:$0xff]  }
  0xed   :  { %v435_v63 = vpack.c.bf16 %v427_v59, %v427_v59  ;;  %v433_v2 = vpack.c.bf16 %v425_v55, %v425_v55  ;;  %v1411_v56 = vld [vmem:[%s1812_s3 + $0x138] sm:$0xff]  }
  0xee   :  { %v434_v0 = vpack.c.bf16 %v426_v60, %v426_v60  ;;  %v436_v3 = vpack.c.bf16 %v428_v62, %v428_v62  ;;  %v1412_v58 = vld [vmem:[%s1812_s3 + $0x1b8] sm:$0xff]   ;;  %s1438_s3 = smov 127  }
  0xf0   :  { %992 = vmatprep.mubr.bf16.mxu0 %v434_v0  ;;  %1032 = vmatprep.mubr.bf16.mxu1 %v436_v3 }
  0xf1   :  { %993 = vmatmul.mubr.bf16.vlgmr.msra.gmra.mrb[8].mxu0 %v433_v2  ;;  %1033 = vmatmul.mubr.bf16.vlgmr.msra.gmra.mrb[8].mxu1 %v435_v63  ;;  %v1191_v63 = vld [vmem:[%s1813_s4] ss:$0 sm:$0xff]  ;;  %s1439_s4 = smov [#allocation2]  }
  0xf2   :  { %1301 = vmatpush3.bf16.msra.mxu0 %v1383_v1  ;;  %1323 = vmatpush3.bf16.msra.mxu1 %v1384_v4  ;;  %s1147_s27 = sshll.u32 %s1439_s4, 4  ;;  %s1148_s27 = int_to_ptr.vmem [resolvable:$true] %s1147_s27 }
  0xf3   :  { %1302 = vmatprep.subr.bf16.mxu0 %v1385_v5  ;;  %1324 = vmatprep.subr.bf16.mxu1 %v1386_v6  ;;  %s1413_s28 = scalar_lea.vmem %s1148_s27, 32  ;;  %p1418_p1 = scmp.lt.s32.totalorder %s1148_s27, %s1148_s27 }
  0xf4   :  { %p1414_p0 = scmp.ne.s32.totalorder %s1148_s27, %s1413_s28  ;;  %p1419_p2 = scmp.lt.s32.totalorder %s1413_s28, %s1413_s28 }
  0xf6   :  { %1303 = vmatpush3.bf16.msra.mxu0 %v1387_v7  ;;  %1325 = vmatpush3.bf16.msra.mxu1 %v1388_v9  ;;  %p1420_p3 = por %p1419_p2, %p1418_p1 }
  0xf7   :  { %1304 = vmatprep.subr.bf16.mxu0 %v1389_v10  ;;  %1326 = vmatprep.subr.bf16.mxu1 %v1390_v12 }
  0xf8   :  { %v377_v19 = vpop.f32.mrb[4].mxu0  ;;  %v418_v21 = vpop.f32.mrb[4].mxu1  ;;  %p1421_p4 = pnand %p1420_p3, %p1414_p0 }
  0xf9   :  { %v379_v20 = vpop.f32.mrb[5].mxu0  ;;  %v420_v25 = vpop.f32.mrb[5].mxu1  ;;  %v419_v50 = vadd.f32 %v418_v21, %v84_v46  ;;  %v378_v51 = vadd.f32 %v377_v19, %v76_v37 }
  0xfa   :  { %1305 = vmatpush3.bf16.msra.mxu0 %v1391_v13  ;;  %v380_v23 = vadd.f32 %v379_v20, %v80_v14  ;;  %v381_v24 = vpop.f32.mrb[6].mxu0  ;;  %1327 = vmatpush3.bf16.msra.mxu1 %v1392_v15  ;;  %v421_v29 = vadd.f32 %v420_v25, %v88_v17  ;;  %v422_v30 = vpop.f32.mrb[6].mxu1 }
  0xfb   :  { %1306 = vmatprep.subr.bf16.mxu0 %v1393_v16  ;;  %v382_v28 = vpop.f32.mrb[7].mxu0  ;;  %1328 = vmatprep.subr.bf16.mxu1 %v1394_v18  ;;  %v423_v33 = vpop.f32.mrb[7].mxu1  ;;  %v431_v55 = vmax.f32 %v419_v50, 0.0  ;;  %v429_v57 = vmax.f32 %v378_v51, 0.0 }
  0xfc   :  { %v430_v32 = vmax.f32 %v380_v23, 0.0  ;;  %v432_v34 = vmax.f32 %v421_v29, 0.0 }
  0xfd   :  { %v439_v59 = vpack.c.bf16 %v431_v55, %v431_v55  ;;  %v437_v60 = vpack.c.bf16 %v429_v57, %v429_v57 }
  0xfe   :  { %1307 = vmatpush3.bf16.msra.mxu0 %v1395_v22  ;;  %v438_v36 = vpack.c.bf16 %v430_v32, %v430_v32  ;;  %1329 = vmatpush3.bf16.msra.mxu1 %v1396_v26  ;;  %v440_v43 = vpack.c.bf16 %v432_v34, %v432_v34 }
  0xff   :  { %1308 = vmatprep.subr.bf16.mxu0 %v1397_v27  ;;  %1330 = vmatprep.subr.bf16.mxu1 %v1398_v31 }
 0x100   :  { %1072 = vmatprep.mubr.bf16.mxu0 %v438_v36  ;;  %1112 = vmatprep.mubr.bf16.mxu1 %v440_v43 }
 0x102   :  { %1309 = vmatpush3.bf16.msra.mxu0 %v1399_v35  ;;  %1331 = vmatpush3.bf16.msra.mxu1 %v1400_v40 }
 0x103   :  { %1310 = vmatprep.subr.bf16.mxu0 %v1401_v42  ;;  %1332 = vmatprep.subr.bf16.mxu1 %v1402_v44 }
 0x106   :  { %1311 = vmatpush3.bf16.msra.mxu0 %v1403_v45  ;;  %1333 = vmatpush3.bf16.msra.mxu1 %v1404_v47 }
 0x107   :  { %1312 = vmatprep.subr.bf16.mxu0 %v1405_v48  ;;  %1334 = vmatprep.subr.bf16.mxu1 %v1406_v49 }
 0x10a   :  { %1313 = vmatpush3.bf16.msra.mxu0 %v1407_v39  ;;  %1335 = vmatpush3.bf16.msra.mxu1 %v1408_v52 }
 0x10b   :  { %1314 = vmatprep.subr.bf16.mxu0 %v1409_v53  ;;  %1336 = vmatprep.subr.bf16.mxu1 %v1410_v54 }
 0x10e   :  { %1315 = vmatpush3.bf16.msra.mxu0 %v1411_v56  ;;  %1337 = vmatpush3.bf16.msra.mxu1 %v1412_v58 }
 0x111   :  { %1073 = vmatmul.mubr.bf16.vlgmr.msra.gmra.mrb[12].mxu0 %v437_v60  ;;  %1113 = vmatmul.mubr.bf16.vlgmr.msra.gmra.mrb[12].mxu1 %v439_v59 }
 0x1c4   :  { %v1272_v61 = vpop.f32.mrb[8].mxu0  ;;  %v1294_v62 = vpop.f32.mrb[8].mxu1 }
 0x1c5   :  { %v1273_v0 = vpop.f32.mrb[9].mxu0  ;;  %v1295_v2 = vpop.f32.mrb[9].mxu1 }
 0x1c6   :  { %v1274_v1 = vadd.f32 %v1273_v0, %v1272_v61  ;;  %v1275_v3 = vpop.f32.mrb[10].mxu0  ;;  %v1296_v4 = vadd.f32 %v1295_v2, %v1294_v62  ;;  %v1297_v5 = vpop.f32.mrb[10].mxu1 }
 0x1c7   :  { %v1276_v6 = vpop.f32.mrb[11].mxu0  ;;  %v1298_v8 = vpop.f32.mrb[11].mxu1 }
 0x1c8   :  { %v995_v7 = vadd.f32 %v1274_v1, %v1191_v63 }
 0x1ca   :  { %v1035_v9 = vadd.f32 %v1296_v4, %v995_v7 }
 0x1e4   :  { %v1316_v10 = vpop.f32.mrb[12].mxu0  ;;  %v1338_v11 = vpop.f32.mrb[12].mxu1 }
 0x1e5   :  { %v1317_v12 = vpop.f32.mrb[13].mxu0  ;;  %v1339_v14 = vpop.f32.mrb[13].mxu1 }
 0x1e6   :  { %v1318_v13 = vadd.f32 %v1317_v12, %v1316_v10  ;;  %v1319_v15 = vpop.f32.mrb[14].mxu0  ;;  %v1340_v16 = vadd.f32 %v1339_v14, %v1338_v11  ;;  %v1341_v17 = vpop.f32.mrb[14].mxu1 }
 0x1e7   :  { %v1320_v18 = vpop.f32.mrb[15].mxu0  ;;  %v1342_v20 = vpop.f32.mrb[15].mxu1 }
 0x1e8   :  { %v1075_v19 = vadd.f32 %v1318_v13, %v1035_v9 }
 0x1ea   :  { %v1115_v21 = vadd.f32 %v1340_v16, %v1075_v19 }
 0x1ec   :  { %1132 = vperm.xlu1 %1347, %v1115_v21   ;;  %1121 = vrot.lane.b32.xlu0 %v1115_v21, %s1438_s3 }
 0x25e   :  { %v1122_v22 = vpop.permute.xlu0 %1121 }
 0x25f   :  { %v1125_v23 = vsel %vm1124_vm1, %v1122_v22, 0.0 }
 0x260   :  { %1126 = vadd.xlane.f32.xlu0 %v1125_v23 }
 0x26b   :  { %v1133_v27 = vpop.permute.xlu1 %1132 }
 0x2ed   :  { %v1127_v24 = vpop.xlane.xlu0 %1126 }
 0x2ee   :  { %v1129_v25 = vmul.f32 0.16666667, %v1127_v24 }
 0x2f0   :  { %v1130_v26 = vsub.f32 %v1115_v21, %v1129_v25 }
 0x2f2   :  { %v1135_v28 = vadd.f32 %v1133_v27, %v1130_v26 }
 0x2f4   :  { %1137 = vrot.lane.b32.xlu1 %v1135_v28, %s1438_s3 }
 0x366   :  { %v1138_v29 = vpop.permute.xlu1 %1137 }
 0x367   :  { %1140 = vst.msk [vmem:[#allocation2] sm:$0x3] %vm1124_vm1, %v1138_v29 }
 0x368   :  { %1424 = shalt.err (!%p1421_p4)
}
 0x369   :  { %s1425_s6 = scalar_lea.hbm %s1814_s5, 32 }
 0x36a   :  { %p1426_p5 = scmp.ne.s32.totalorder %s1814_s5, %s1425_s6  ;;  %p1429_p6 = scmp.lt.u32.totalorder %s1425_s6, %s1814_s5 }
 0x36c   :  { %p1431_p7 = pnand %p1429_p6, %p1426_p5 }
 0x36e   :  { %1434 = shalt.err (!%p1431_p7)
}
 0x36f   :  { %1150 = dma.vmem_to_hbm [thread:$0]  %s1148_s27, 32, %s1814_s5, [#allocation3]  }
 0x370   :  { %1435 = dma.done.wait [#allocation3], 32  }
 0x371   :  { %1436 = vsyncadd [#allocation3], 4294967264 }
 0x372   :  { %1154 = vsyncpa [#allocation3], 1 }

</bundles_post_ra>
